<compile_context>
chip_gen: v5e
topology: v5e:2x2
jax: 0.10.0
libtpu: 0.0.40
codegen_flags: <defaults>
</compile_context>

<pallas_src>
import functools

import jax
import jax.numpy as jnp
from jax.experimental import pallas as pl
from jax.experimental.pallas import tpu as pltpu


# ----------------------------- Pallas kernels ------------------------------

def _qkv_attn_kernel(patches_ref, w_ref, b_ref, out_ref, *, Nh, dk, dv):
    # patches: (1, CKK, HW); w: (2dk+dv, CKK); b: (2dk+dv, 1)
    # out: (1, Nh, dvh, HW)   [natural/transposed layout, lane-dense]
    dkh = dk // Nh
    dvh = dv // Nh
    # Fused im2col conv: (2dk+dv, CKK) @ (CKK, HW) + bias, lane-dense result.
    qkv = jnp.dot(w_ref[...], patches_ref[0],
                  preferred_element_type=jnp.float32) + b_ref[...]
    # q rows already carry the dkh**-0.5 scale (folded into weights/bias).
    q_t = qkv[:dk, :].T                      # (HW, dk): one small XLU transpose
    for h in range(Nh):                      # Nh is tiny -> static unroll
        q_h = q_t[:, h * dkh:(h + 1) * dkh]                      # (HW, dkh)
        k_h = qkv[dk + h * dkh: dk + (h + 1) * dkh, :]           # (dkh, HW)
        v_h = qkv[2 * dk + h * dvh: 2 * dk + (h + 1) * dvh, :]   # (dvh, HW)
        # logits[i, j] = sum_d q[d, i] * k[d, j]
        logits = jnp.dot(q_h, k_h, preferred_element_type=jnp.float32)  # (HW, HW)
        m = jnp.max(logits, axis=-1, keepdims=True)
        e = jnp.exp(logits - m)
        denom = jnp.sum(e, axis=-1, keepdims=True)
        weights = e * pl.reciprocal(denom, approx=True)          # softmax
        # out[d, i] = sum_j v[d, j] * weights[i, j]  -> (dvh, HW), lane-dense.
        out_ref[0, h] = jax.lax.dot_general(
            v_h, weights, (((1,), (1,)), ((), ())),
            preferred_element_type=jnp.float32)


def _conv1x1_kernel(x_ref, w_ref, b_ref, out_ref):
    # x: (1, Cin, HW), w: (Cout, Cin), b: (Cout, 1) -> out: (1, Cout, HW)
    out_ref[0] = (
        jnp.dot(w_ref[...], x_ref[0], preferred_element_type=jnp.float32)
        + b_ref[...]
    )


# ------------------------------ wrappers ------------------------------------

def _im2col(x, K, stride, padding):
    # x: (B, Cin, H, W) NCHW -> patches (B, Cin*K*K, Ho*Wo)   [lane-dense HW]
    B, C, H, W = x.shape
    xp = jnp.pad(x, ((0, 0), (0, 0), (padding, padding), (padding, padding)))
    Ho = (H + 2 * padding - K) // stride + 1
    Wo = (W + 2 * padding - K) // stride + 1
    cols = []
    for ki in range(K):
        for kj in range(K):
            cols.append(
                xp[:, :, ki:ki + stride * Ho:stride, kj:kj + stride * Wo:stride])
    p = jnp.stack(cols, axis=2)              # (B, C, K*K, Ho, Wo)
    p = p.reshape(B, C * K * K, Ho * Wo)     # row index = c*K*K + ki*K + kj
    return p, Ho, Wo


def qkv_attention_pallas(patches, wqkv, bqkv, *, Nh, dk, dv):
    # patches: (B, CKK, HW) -> attention output in natural layout (B, Nh, dvh, HW)
    B, CKK, HW = patches.shape
    dvh = dv // Nh
    Cqkv = 2 * dk + dv
    kern = functools.partial(_qkv_attn_kernel, Nh=Nh, dk=dk, dv=dv)
    return pl.pallas_call(
        kern,
        out_shape=jax.ShapeDtypeStruct((B, Nh, dvh, HW), jnp.float32),
        grid=(B,),
        in_specs=[
            pl.BlockSpec((1, CKK, HW), lambda b: (b, 0, 0)),
            pl.BlockSpec((Cqkv, CKK), lambda b: (0, 0)),
            pl.BlockSpec((Cqkv, 1), lambda b: (0, 0)),
        ],
        out_specs=pl.BlockSpec((1, Nh, dvh, HW), lambda b: (b, 0, 0, 0)),
        compiler_params=pltpu.CompilerParams(dimension_semantics=("parallel",)),
    )(patches, wqkv, bqkv)


def attn_out_1x1_pallas(x, w, b):
    # x: (B, Cin, HW); w: (Cout, Cin); b: (Cout, 1) -> (B, Cout, HW) lane-dense
    B, Cin, HW = x.shape
    Cout = w.shape[0]
    return pl.pallas_call(
        _conv1x1_kernel,
        out_shape=jax.ShapeDtypeStruct((B, Cout, HW), jnp.float32),
        grid=(B,),
        in_specs=[
            pl.BlockSpec((1, Cin, HW), lambda b: (b, 0, 0)),
            pl.BlockSpec((Cout, Cin), lambda b: (0, 0)),
            pl.BlockSpec((Cout, 1), lambda b: (0, 0)),
        ],
        out_specs=pl.BlockSpec((1, Cout, HW), lambda b: (b, 0, 0)),
        compiler_params=pltpu.CompilerParams(dimension_semantics=("parallel",)),
    )(x, w, b)


# ----------------------------- Attention2d ----------------------------------

class Attention2dPallas:
    def __init__(self, in_channels, out_channels, kernel_size, dk, dv, Nh,
                 shape=0, relative=False, stride=1, key=None):
        assert Nh != 0
        assert dk % Nh == 0 and dv % Nh == 0
        assert stride in (1, 2)
        assert not relative  # TODO(synk): relative positional logits not implemented.
        self.dk, self.dv, self.Nh = dk, dv, Nh
        self.kernel_size = kernel_size
        self.stride = stride
        self.padding = (kernel_size - 1) // 2

        k = jax.random.PRNGKey(0) if key is None else key
        ks = jax.random.split(k, 6)
        s = 0.1
        # conv_out parameters kept for structural parity with the PyTorch module,
        # but the conv is never evaluated: the reference forward returns attn_out
        # before the torch.cat, so conv_out's values are unused (only its shape
        # mattered, which we derive analytically from stride/padding/kernel_size).
        self.conv_out_w = s * jax.random.normal(
            ks[0], (out_channels - dv, in_channels, kernel_size, kernel_size),
            dtype=jnp.float32)
        self.conv_out_b = s * jax.random.normal(
            ks[1], (out_channels - dv,), dtype=jnp.float32)
        self.qkv_w = s * jax.random.normal(
            ks[2], (2 * dk + dv, in_channels, kernel_size, kernel_size),
            dtype=jnp.float32)
        self.qkv_b = s * jax.random.normal(
            ks[3], (2 * dk + dv,), dtype=jnp.float32)
        self.attn_out_w = s * jax.random.normal(
            ks[4], (dv, dv, 1, 1), dtype=jnp.float32)
        self.attn_out_b = s * jax.random.normal(ks[5], (dv,), dtype=jnp.float32)

        # Pre-fold the dkh**-0.5 scale into the q rows of the qkv conv weight
        # and bias (q *= scale happens after conv+bias in the reference, so
        # scaling both W_q and b_q is exactly equivalent).
        dkh = dk // Nh
        scale = dkh ** (-0.5)
        CKK = in_channels * kernel_size * kernel_size
        wq = self.qkv_w[:dk].reshape(dk, CKK) * scale
        wkv = self.qkv_w[dk:].reshape(dk + dv, CKK)
        self._wqkv = jnp.concatenate([wq, wkv], axis=0)               # (2dk+dv, CKK)
        self._bqkv = jnp.concatenate(
            [self.qkv_b[:dk] * scale, self.qkv_b[dk:]]).reshape(-1, 1)  # (2dk+dv, 1)
        self._w1x1 = self.attn_out_w.reshape(dv, dv)
        self._b1x1 = self.attn_out_b.reshape(dv, 1)

        self._fwd = jax.jit(self._forward)

    def _forward(self, x):
        dk, dv, Nh = self.dk, self.dv, self.Nh
        dvh = dv // Nh
        B = x.shape[0]

        # Single im2col pass over x, emitted directly in (B, CKK, HW) layout.
        patches, Ho, Wo = _im2col(x, self.kernel_size, self.stride, self.padding)
        HW = Ho * Wo

        # Fused qkv-conv + multi-head attention, one grid step per batch.
        # Output layout: (B, Nh, dvh, HW) (lane-dense transpose of the
        # reference (B, Nh, HW, dvh) attention output).
        attn_nat = qkv_attention_pallas(patches, self._wqkv, self._bqkv,
                                        Nh=Nh, dk=dk, dv=dv)

        # Bug-compatible raw reshape of the reference:
        #   (B, Nh, HW, dvh) --torch.reshape--> (B, Nh, dvh, H, W) --> (B, Nh*dvh, H, W)
        # i.e. a flat row-major reinterpretation of the (B, Nh, HW, dvh) buffer.
        attn_ref_layout = attn_nat.transpose(0, 1, 3, 2)      # (B, Nh, HW, dvh)
        combined = attn_ref_layout.reshape(B, Nh * dvh, HW)   # (B, dv, HW)

        # 1x1 attn_out conv, lane-dense output.
        out = attn_out_1x1_pallas(combined, self._w1x1, self._b1x1)   # (B, dv, HW)
        return out.reshape(B, dv, Ho, Wo)

    def __call__(self, x):
        return self._fwd(x)


# --------------------------------- main --------------------------------------

if __name__ == "__main__":
    in_channels, out_channels = 4, 12
    kernel_size, dk, dv, Nh = 3, 8, 8, 2
    B, H, W = 2, 16, 16

    key = jax.random.PRNGKey(0)
    kx, kp = jax.random.split(key)
    x = jax.random.normal(kx, (B, in_channels, H, W), dtype=jnp.float32)

    module = Attention2dPallas(in_channels, out_channels, kernel_size,
                               dk, dv, Nh, shape=0, relative=False, stride=1,
                               key=kp)
    out = module(x)
    jax.block_until_ready(out)
    assert out.shape == (B, dv, H, W), out.shape
    assert bool(jnp.all(jnp.isfinite(out)))
    print("KERNEL_OK")
</pallas_src>

<mosaic_0001>
module attributes {stable_mosaic.version = 11 : i64} {
  func.func @_qkv_attn_kernel(%arg0: i32, %arg1: memref<1x36x256xf32, #tpu.memory_space<vmem>>, %arg2: memref<24x36xf32, #tpu.memory_space<vmem>>, %arg3: memref<24x1xf32, #tpu.memory_space<vmem>>, %arg4: memref<1x2x4x256xf32, #tpu.memory_space<vmem>>) attributes {dimension_semantics = [#tpu.dimension_semantics<parallel>], iteration_bounds = array<i64: 2>, scalar_prefetch = 0 : i64, scratch_operands = 0 : i64, tpu.core_type = #tpu.core_type<tc>, window_params = [{transform_indices = @transform_0, window_bounds = array<i64: 1, 36, 256>}, {pipeline_mode = #tpu.pipeline_mode<synchronous>, transform_indices = @transform_1, window_bounds = array<i64: 24, 36>}, {pipeline_mode = #tpu.pipeline_mode<synchronous>, transform_indices = @transform_2, window_bounds = array<i64: 24, 1>}, {transform_indices = @transform_3, window_bounds = array<i64: 1, 2, 4, 256>}]} {
    %c0 = arith.constant 0 : index
    %c0_0 = arith.constant 0 : index
    %0 = vector.load %arg2[%c0, %c0_0] : memref<24x36xf32, #tpu.memory_space<vmem>>, vector<24x36xf32>
    %c0_1 = arith.constant 0 : index
    %c0_2 = arith.constant 0 : index
    %c0_3 = arith.constant 0 : index
    %1 = vector.load %arg1[%c0_1, %c0_2, %c0_3] : memref<1x36x256xf32, #tpu.memory_space<vmem>>, vector<1x36x256xf32>
    %2 = vector.shape_cast %1 : vector<1x36x256xf32> to vector<36x256xf32>
    %cst = arith.constant dense<0.000000e+00> : vector<24x256xf32>
    %3 = tpu.matmul %0, %2, %cst {dimension_numbers = #tpu.dot_dimension_numbers<[1], [0], [0], [1], [0, 0, 1, 1], [], []>} : vector<24x36xf32>, vector<36x256xf32>, vector<24x256xf32> -> vector<24x256xf32>
    %c0_4 = arith.constant 0 : index
    %c0_5 = arith.constant 0 : index
    %4 = vector.load %arg3[%c0_4, %c0_5] : memref<24x1xf32, #tpu.memory_space<vmem>>, vector<24x1xf32>
    %5 = vector.broadcast %4 : vector<24x1xf32> to vector<24x256xf32>
    %6 = arith.addf %3, %5 : vector<24x256xf32>
    %7 = vector.extract_strided_slice %6 {offsets = [0, 0], sizes = [8, 256], strides = [1, 1]} : vector<24x256xf32> to vector<8x256xf32>
    %8 = tpu.transpose %7, [1, 0] : vector<8x256xf32> -> vector<256x8xf32>
    %9 = vector.extract_strided_slice %8 {offsets = [0, 0], sizes = [256, 4], strides = [1, 1]} : vector<256x8xf32> to vector<256x4xf32>
    %10 = vector.extract_strided_slice %6 {offsets = [8, 0], sizes = [4, 256], strides = [1, 1]} : vector<24x256xf32> to vector<4x256xf32>
    %11 = vector.extract_strided_slice %6 {offsets = [16, 0], sizes = [4, 256], strides = [1, 1]} : vector<24x256xf32> to vector<4x256xf32>
    %cst_6 = arith.constant dense<0.000000e+00> : vector<256x256xf32>
    %12 = tpu.matmul %9, %10, %cst_6 {dimension_numbers = #tpu.dot_dimension_numbers<[1], [0], [0], [1], [0, 0, 1, 1], [], []>} : vector<256x4xf32>, vector<4x256xf32>, vector<256x256xf32> -> vector<256x256xf32>
    %cst_7 = arith.constant dense<0xFF800000> : vector<256xf32>
    %13 = vector.multi_reduction <maximumf>, %12, %cst_7 [1] : vector<256x256xf32> to vector<256xf32>
    %14 = vector.shape_cast %13 : vector<256xf32> to vector<256x1xf32>
    %15 = vector.broadcast %14 : vector<256x1xf32> to vector<256x256xf32>
    %16 = arith.subf %12, %15 : vector<256x256xf32>
    %17 = math.exp %16 : vector<256x256xf32>
    %cst_8 = arith.constant dense<0.000000e+00> : vector<256xf32>
    %18 = vector.multi_reduction <add>, %17, %cst_8 [1] : vector<256x256xf32> to vector<256xf32>
    %19 = vector.shape_cast %18 : vector<256xf32> to vector<256x1xf32>
    %20 = tpu.reciprocal %19 {approx = true} : vector<256x1xf32> -> vector<256x1xf32>
    %21 = vector.broadcast %20 : vector<256x1xf32> to vector<256x256xf32>
    %22 = arith.mulf %17, %21 : vector<256x256xf32>
    %cst_9 = arith.constant dense<0.000000e+00> : vector<4x256xf32>
    %23 = tpu.matmul %11, %22, %cst_9 {dimension_numbers = #tpu.dot_dimension_numbers<[1], [1], [0], [0], [0, 0, 1, 0], [], []>} : vector<4x256xf32>, vector<256x256xf32>, vector<4x256xf32> -> vector<4x256xf32>
    %c0_10 = arith.constant 0 : index
    %c0_11 = arith.constant 0 : index
    %c0_12 = arith.constant 0 : index
    %c0_13 = arith.constant 0 : index
    %24 = vector.load %arg4[%c0_10, %c0_11, %c0_12, %c0_13] : memref<1x2x4x256xf32, #tpu.memory_space<vmem>>, vector<1x1x4x256xf32>
    %25 = vector.shape_cast %24 : vector<1x1x4x256xf32> to vector<4x256xf32>
    %26 = vector.shape_cast %23 : vector<4x256xf32> to vector<1x1x4x256xf32>
    tpu.vector_store %arg4[%c0_10, %c0_11, %c0_12, %c0_13], %26 {strides = array<i32>} : memref<1x2x4x256xf32, #tpu.memory_space<vmem>>, vector<1x1x4x256xf32>,
    %27 = vector.extract_strided_slice %8 {offsets = [0, 4], sizes = [256, 4], strides = [1, 1]} : vector<256x8xf32> to vector<256x4xf32>
    %28 = vector.extract_strided_slice %6 {offsets = [12, 0], sizes = [4, 256], strides = [1, 1]} : vector<24x256xf32> to vector<4x256xf32>
    %29 = vector.extract_strided_slice %6 {offsets = [20, 0], sizes = [4, 256], strides = [1, 1]} : vector<24x256xf32> to vector<4x256xf32>
    %cst_14 = arith.constant dense<0.000000e+00> : vector<256x256xf32>
    %30 = tpu.matmul %27, %28, %cst_14 {dimension_numbers = #tpu.dot_dimension_numbers<[1], [0], [0], [1], [0, 0, 1, 1], [], []>} : vector<256x4xf32>, vector<4x256xf32>, vector<256x256xf32> -> vector<256x256xf32>
    %cst_15 = arith.constant dense<0xFF800000> : vector<256xf32>
    %31 = vector.multi_reduction <maximumf>, %30, %cst_15 [1] : vector<256x256xf32> to vector<256xf32>
    %32 = vector.shape_cast %31 : vector<256xf32> to vector<256x1xf32>
    %33 = vector.broadcast %32 : vector<256x1xf32> to vector<256x256xf32>
    %34 = arith.subf %30, %33 : vector<256x256xf32>
    %35 = math.exp %34 : vector<256x256xf32>
    %cst_16 = arith.constant dense<0.000000e+00> : vector<256xf32>
    %36 = vector.multi_reduction <add>, %35, %cst_16 [1] : vector<256x256xf32> to vector<256xf32>
    %37 = vector.shape_cast %36 : vector<256xf32> to vector<256x1xf32>
    %38 = tpu.reciprocal %37 {approx = true} : vector<256x1xf32> -> vector<256x1xf32>
    %39 = vector.broadcast %38 : vector<256x1xf32> to vector<256x256xf32>
    %40 = arith.mulf %35, %39 : vector<256x256xf32>
    %cst_17 = arith.constant dense<0.000000e+00> : vector<4x256xf32>
    %41 = tpu.matmul %29, %40, %cst_17 {dimension_numbers = #tpu.dot_dimension_numbers<[1], [1], [0], [0], [0, 0, 1, 0], [], []>} : vector<4x256xf32>, vector<256x256xf32>, vector<4x256xf32> -> vector<4x256xf32>
    %c0_18 = arith.constant 0 : index
    %c1 = arith.constant 1 : index
    %c0_19 = arith.constant 0 : index
    %c0_20 = arith.constant 0 : index
    %42 = vector.load %arg4[%c0_18, %c1, %c0_19, %c0_20] : memref<1x2x4x256xf32, #tpu.memory_space<vmem>>, vector<1x1x4x256xf32>
    %43 = vector.shape_cast %42 : vector<1x1x4x256xf32> to vector<4x256xf32>
    %44 = vector.shape_cast %41 : vector<4x256xf32> to vector<1x1x4x256xf32>
    tpu.vector_store %arg4[%c0_18, %c1, %c0_19, %c0_20], %44 {strides = array<i32>} : memref<1x2x4x256xf32, #tpu.memory_space<vmem>>, vector<1x1x4x256xf32>,
    return
  }
  func.func @transform_0(%arg0: i32) -> (i32, i32, i32) {
    %c0_i32 = arith.constant 0 : i32
    %c0_i32_0 = arith.constant 0 : i32
    %c0_i32_1 = arith.constant 0 : i32
    return %arg0, %c0_i32, %c0_i32_0 : i32, i32, i32
  }
  func.func @transform_1(%arg0: i32) -> (i32, i32) {
    %c0_i32 = arith.constant 0 : i32
    %c0_i32_0 = arith.constant 0 : i32
    %c0_i32_1 = arith.constant 0 : i32
    return %c0_i32, %c0_i32_0 : i32, i32
  }
  func.func @transform_2(%arg0: i32) -> (i32, i32) {
    %c0_i32 = arith.constant 0 : i32
    %c0_i32_0 = arith.constant 0 : i32
    %c0_i32_1 = arith.constant 0 : i32
    return %c0_i32, %c0_i32_0 : i32, i32
  }
  func.func @transform_3(%arg0: i32) -> (i32, i32, i32, i32) {
    %c0_i32 = arith.constant 0 : i32
    %c0_i32_0 = arith.constant 0 : i32
    %c0_i32_1 = arith.constant 0 : i32
    %c0_i32_2 = arith.constant 0 : i32
    return %arg0, %c0_i32, %c0_i32_0, %c0_i32_1 : i32, i32, i32, i32
  }
}

module attributes {stable_mosaic.version = 11 : i64} {
  func.func @_conv1x1_kernel(%arg0: i32, %arg1: memref<1x8x256xf32, #tpu.memory_space<vmem>>, %arg2: memref<8x8xf32, #tpu.memory_space<vmem>>, %arg3: memref<8x1xf32, #tpu.memory_space<vmem>>, %arg4: memref<1x8x256xf32, #tpu.memory_space<vmem>>) attributes {dimension_semantics = [#tpu.dimension_semantics<parallel>], iteration_bounds = array<i64: 2>, scalar_prefetch = 0 : i64, scratch_operands = 0 : i64, tpu.core_type = #tpu.core_type<tc>, window_params = [{transform_indices = @transform_0, window_bounds = array<i64: 1, 8, 256>}, {pipeline_mode = #tpu.pipeline_mode<synchronous>, transform_indices = @transform_1, window_bounds = array<i64: 8, 8>}, {pipeline_mode = #tpu.pipeline_mode<synchronous>, transform_indices = @transform_2, window_bounds = array<i64: 8, 1>}, {transform_indices = @transform_3, window_bounds = array<i64: 1, 8, 256>}]} {
    %c0 = arith.constant 0 : index
    %c0_0 = arith.constant 0 : index
    %0 = vector.load %arg2[%c0, %c0_0] : memref<8x8xf32, #tpu.memory_space<vmem>>, vector<8x8xf32>
    %c0_1 = arith.constant 0 : index
    %c0_2 = arith.constant 0 : index
    %c0_3 = arith.constant 0 : index
    %1 = vector.load %arg1[%c0_1, %c0_2, %c0_3] : memref<1x8x256xf32, #tpu.memory_space<vmem>>, vector<1x8x256xf32>
    %2 = vector.shape_cast %1 : vector<1x8x256xf32> to vector<8x256xf32>
    %cst = arith.constant dense<0.000000e+00> : vector<8x256xf32>
    %3 = tpu.matmul %0, %2, %cst {dimension_numbers = #tpu.dot_dimension_numbers<[1], [0], [0], [1], [0, 0, 1, 1], [], []>} : vector<8x8xf32>, vector<8x256xf32>, vector<8x256xf32> -> vector<8x256xf32>
    %c0_4 = arith.constant 0 : index
    %c0_5 = arith.constant 0 : index
    %4 = vector.load %arg3[%c0_4, %c0_5] : memref<8x1xf32, #tpu.memory_space<vmem>>, vector<8x1xf32>
    %5 = vector.broadcast %4 : vector<8x1xf32> to vector<8x256xf32>
    %6 = arith.addf %3, %5 : vector<8x256xf32>
    %c0_6 = arith.constant 0 : index
    %c0_7 = arith.constant 0 : index
    %c0_8 = arith.constant 0 : index
    %7 = vector.load %arg4[%c0_6, %c0_7, %c0_8] : memref<1x8x256xf32, #tpu.memory_space<vmem>>, vector<1x8x256xf32>
    %8 = vector.shape_cast %7 : vector<1x8x256xf32> to vector<8x256xf32>
    %9 = vector.shape_cast %6 : vector<8x256xf32> to vector<1x8x256xf32>
    tpu.vector_store %arg4[%c0_6, %c0_7, %c0_8], %9 {strides = array<i32>} : memref<1x8x256xf32, #tpu.memory_space<vmem>>, vector<1x8x256xf32>,
    return
  }
  func.func @transform_0(%arg0: i32) -> (i32, i32, i32) {
    %c0_i32 = arith.constant 0 : i32
    %c0_i32_0 = arith.constant 0 : i32
    %c0_i32_1 = arith.constant 0 : i32
    return %arg0, %c0_i32, %c0_i32_0 : i32, i32, i32
  }
  func.func @transform_1(%arg0: i32) -> (i32, i32) {
    %c0_i32 = arith.constant 0 : i32
    %c0_i32_0 = arith.constant 0 : i32
    %c0_i32_1 = arith.constant 0 : i32
    return %c0_i32, %c0_i32_0 : i32, i32
  }
  func.func @transform_2(%arg0: i32) -> (i32, i32) {
    %c0_i32 = arith.constant 0 : i32
    %c0_i32_0 = arith.constant 0 : i32
    %c0_i32_1 = arith.constant 0 : i32
    return %c0_i32, %c0_i32_0 : i32, i32
  }
  func.func @transform_3(%arg0: i32) -> (i32, i32, i32) {
    %c0_i32 = arith.constant 0 : i32
    %c0_i32_0 = arith.constant 0 : i32
    %c0_i32_1 = arith.constant 0 : i32
    return %arg0, %c0_i32, %c0_i32_0 : i32, i32, i32
  }
}

</mosaic_0001>

<bundles_post_ra>
// kernel: _forward.3
= control target key start
LH: loop header
LB: loop body
LE: loop exit
PB: predicated region body
PF: predicated region fallthrough
CT: control target
= control target key end

     0   :  { %s335_s12 = smov 0   ;;  %s358_s0 = inlined_call_operand.vmem [shape: f32[2,8,256], index: 0, kind: input, shape index: {}]   ;;  %s359_s1 = inlined_call_operand.vmem [shape: f32[8,8], index: 1, kind: input, shape index: {}]   ;;  %s360_s2 = inlined_call_operand.vmem [shape: f32[8,1], index: 2, kind: input, shape index: {}]   ;;  %s361_s3 = inlined_call_operand.vmem [shape: f32[2,8,256], index: 3, kind: output, shape index: {}]  }
   0x1 LB: > { %s281_s13 = sadd.s32 4294967295, %s312_s12   ;;  %p285_p0 = scmp.ge.s32.totalorder %s312_s12, 1  ;;  %s312_s12 = sphi %s335_s12, %s13_s12  }
   0x2   : > { %p137_p1 = scmp.lt.s32.totalorder %s312_s12, 3 }
   0x4   : > { %p138_p2 = pnand %p285_p0, %p137_p1 }
   0x5   : > { %p161_p3 = scmp.lt.s32.totalorder (!%p138_p2), %s281_s13, 1 }
   0x6   : > { %141 = sbr.rel (%p138_p2) target bundleno = 146 (0x92), region = 32 }
   0xb   : > { %v174_v0 = vld [vmem:[%s360_s2] sm:$0xff]  ;;  %v314_v1 = vmov 0   ;;  %s363_s13 = smov (!%p161_p3, %s281_s13), 1  ;;  %vm180_vm0 = vcmask 64512  }
   0xc   : > { %305 = vset.pattern.permute.xlu0 %v314_v1  ;;  %s294_s16 = sshll.u32 %s363_s13, 4  ;;  %v171_v2 = vld [vmem:[%s359_s1] sm:$0xff] }
   0xd   : > { %177 = vperm.xlu0 %305, %v174_v0   ;;  %s165_s19 = scalar_lea.vmem %s358_s0, %s294_s16  ;;  %s170_s24 = scalar_lea.vmem %s361_s3, %s294_s16 }
   0xe   : > { %v172_v3 = vld [vmem:[%s165_s19] sm:$0xff]  ;;  %v173_v4 = vld [vmem:[%s165_s19 + $0x8] sm:$0xff] }
   0xf   : > { %199 = vmatpush.msra.mxu0 %v172_v3  ;;  %219 = vmatpush.msra.mxu1 %v173_v4 }
  0x10   : > { %290 = vmatmul.msk.f32.vlgmr.msra.gmra.mxu0 %vm180_vm0, %v171_v2  ;;  %291 = vmatmul.msk.f32.vlgmr.msra.gmra.mxu1 %vm180_vm0, %v171_v2 }
  0x7f   : > { %v178_v5 = vpop.permute.xlu0 %177 }
  0x8d   : > { %v201_v6 = vpop.f32.mrf.mxu0  ;;  %v221_v7 = vpop.f32.mrf.mxu1 }
  0x8e   : > { %v202_v8 = vadd.f32 %v201_v6, %v178_v5  ;;  %v222_v9 = vadd.f32 %v221_v7, %v178_v5 }
  0x90   : > { %224 = vst [vmem:[%s170_s24] sm:$0xff] %v202_v8 }
  0x91   : > { %225 = vst [vmem:[%s170_s24 + $0x8] sm:$0xff] %v222_v9 }
  0x92 PF: > { %s13_s12 = sadd.s32 1, %s312_s12  }
  0x93   : > { %p10_p4 = scmp.ge.s32.totalorder %s13_s12, 4  }
  0x95   :  { %12 = sbr.rel (!%p10_p4) target bundleno = 1 (0x1), region = 62 }

// kernel: _forward.2
= control target key start
LH: loop header
LB: loop body
LE: loop exit
PB: predicated region body
PF: predicated region fallthrough
CT: control target
= control target key end

     0   :  { %s2797_s12 = smov 0   ;;  %s4427_s0 = inlined_call_operand.vmem [shape: f32[2,36,256], index: 0, kind: input, shape index: {}]   ;;  %s4428_s1 = inlined_call_operand.vmem [shape: f32[24,36], index: 1, kind: input, shape index: {}]   ;;  %s4429_s2 = inlined_call_operand.vmem [shape: f32[24,1], index: 2, kind: input, shape index: {}]   ;;  %s4430_s3 = inlined_call_operand.vmem [shape: f32[2,2,4,256], index: 3, kind: output, shape index: {}]  }
   0x1 LB: > { %s2218_s13 = sadd.s32 4294967295, %s2773_s12   ;;  %p2222_p0 = scmp.ge.s32.totalorder %s2773_s12, 1  ;;  %s2773_s12 = sphi %s2797_s12, %s13_s12  }
   0x2   : > { %p137_p1 = scmp.lt.s32.totalorder %s2773_s12, 3 }
   0x4   : > { %p138_p2 = pnand %p2222_p0, %p137_p1 }
   0x6   : > { %141 = sbr.rel (%p138_p2) target bundleno = 1977 (0x7b9), region = 32 }
   0xb   : > { %p161_p3 = scmp.lt.s32.totalorder %s2218_s13, 1  ;;  %v2775_v0 = vmov 0   ;;  %v184_v1 = vld [vmem:[%s4429_s2] sm:$0xff]  ;;  %vm212_vm0 = vcmask 1043456   ;;  %v185_v6 = vld [vmem:[%s4429_s2 + $0x8] sm:$0xff]  ;;  %vm202_vm1 = vcmask 293888  }
   0xc   : > { %2382 = vset.pattern.permute.xlu0 %v2775_v0  ;;  %v171_v13 = vld [vmem:[%s4428_s1] sm:$0xff]  ;;  %v172_v14 = vld [vmem:[%s4428_s1 + $0x8] sm:$0xff]  ;;  %v173_v24 = vld [vmem:[%s4428_s1 + $0x10] sm:$0xff]  ;;  %vm335_vm2 = vcmask 31744   ;;  %s2776_s28 = smov 124  }
   0xd   : > { %s4701_s13 = smov (!%p161_p3, %s2218_s13), 1  ;;  %189 = vperm.xlu0 %2382, %v184_v1  }
   0xe   : > { %s2370_s16 = smul.u32 80, %s4701_s13  ;;  %s2369_s4 = sshll.u32 %s4701_s13, 4 }
   0xf   : > { %s3768_s7 = scalar_lea.vmem %s4430_s3, %s2369_s4 }
  0x10   : > { %s165_s19 = scalar_lea.vmem %s4427_s0, %s2370_s16 }
  0x11   : > { %v182_v2 = vld [vmem:[%s165_s19 + $0x40] sm:$0xf]  ;;  %v183_v3 = vld [vmem:[%s165_s19 + $0x48] sm:$0xf]  ;;  %v180_v4 = vld [vmem:[%s165_s19 + $0x30] sm:$0xff] }
  0x12   : > { %2226 = vmatpush.msk.msra.mxu2 %vm212_vm0, %v182_v2  ;;  %2230 = vmatpush.msk.msra.mxu3 %vm212_vm0, %v183_v3  ;;  %v181_v5 = vld [vmem:[%s165_s19 + $0x38] sm:$0xff]  ;;  %v178_v7 = vld [vmem:[%s165_s19 + $0x20] sm:$0xff]  ;;  %v179_v8 = vld [vmem:[%s165_s19 + $0x28] sm:$0xff] }
  0x13   : > { %v176_v9 = vld [vmem:[%s165_s19 + $0x10] sm:$0xff]  ;;  %v177_v10 = vld [vmem:[%s165_s19 + $0x18] sm:$0xff]  ;;  %v174_v11 = vld [vmem:[%s165_s19] sm:$0xff] }
  0x14   : > { %231 = vmatpush.msra.mxu2 %v180_v4  ;;  %257 = vmatpush.msra.mxu3 %v181_v5  ;;  %v175_v12 = vld [vmem:[%s165_s19 + $0x8] sm:$0xff] }
  0x15   : > { %194 = vperm.xlu0 %2382, %v185_v6  }
  0x16   : > { %232 = vmatpush.msra.mxu2 %v178_v7  ;;  %258 = vmatpush.msra.mxu3 %v179_v8 }
  0x18   : > { %233 = vmatpush.msra.mxu2 %v176_v9  ;;  %259 = vmatpush.msra.mxu3 %v177_v10 }
  0x1a   : > { %234 = vmatpush.msra.mxu2 %v174_v11  ;;  %260 = vmatpush.msra.mxu3 %v175_v12 }
  0x1b   : > { %2227 = vmatmul.msk.f32.vlgmr.msra.gmra.mxu2 %vm202_vm1, %v171_v13  ;;  %2231 = vmatmul.msk.f32.vlgmr.msra.gmra.mxu3 %vm202_vm1, %v171_v13 }
  0x23   : > { %2228 = vmatmul.msk.f32.gmra.mxu2 %vm202_vm1, %v172_v14  ;;  %2232 = vmatmul.msk.f32.gmra.mxu3 %vm202_vm1, %v172_v14 }
  0x2b   : > { %2229 = vmatmul.msk.f32.gmra.mxu2 %vm202_vm1, %v173_v24  ;;  %2233 = vmatmul.msk.f32.gmra.mxu3 %vm202_vm1, %v173_v24 }
  0x7f   : > { %v190_v15 = vpop.permute.xlu0 %189 }
  0x87   : > { %v195_v19 = vpop.permute.xlu0 %194 }
  0x9e   : > { %v236_v16 = vpop.f32.mrf.mxu2  ;;  %v262_v17 = vpop.f32.mrf.mxu3 }
  0x9f   : > { %v237_v18 = vadd.f32 %v236_v16, %v190_v15  ;;  %v263_v25 = vadd.f32 %v262_v17, %v190_v15 }
  0xa1   : > { %271 = vxpose.xlu1.b32.start.end [1/1] (short) %v237_v18, 128 }
  0xa6   : > { %v239_v20 = vpop.f32.mrf.mxu2  ;;  %v265_v21 = vpop.f32.mrf.mxu3 }
  0xa7   : > { %v2829_v22 = vadd.f32 %v239_v20, %v195_v19  ;;  %v2831_v23 = vadd.f32 %v265_v21, %v195_v19 }
  0xa9   : > { %4520 = vst [vmem:[#allocation2_spill] sm:$0xff] %v2829_v22  ;;  %2234 = vmatpush.msk.msrb.mxu2 %vm212_vm0, %v2829_v22  ;;  %2267 = vmatpush.msk.msrb.mxu3 %vm212_vm0, %v2831_v23 }
  0xaa   : > { %4521 = vst [vmem:[#allocation3_spill] sm:$0xff] %v2831_v23 }
  0xae   : > { %v2938_v42 = vpop.f32.mrf.mxu2  ;;  %v2940_v43 = vpop.f32.mrf.mxu3 }
  0xaf   : > { %4537 = vst [vmem:[#allocation19_spill] sm:$0xff] %v2938_v42 }
  0xb0   : > { %4538 = vst [vmem:[#allocation20_spill] sm:$0xff] %v2940_v43 }
 0x121   : > { %303 = vxpose.xlu1.b32.start.end [1/1] (short) %v263_v25, 128 }
 0x145   : > { %v2842_v26 = vpop.trf.xlu1 }
 0x146   : > { %4522 = vst [vmem:[#allocation4_spill] sm:$0xff] %v2842_v26  ;;  %2235 = vmatmul.msk.f32.vlgmr.msrb.gmra.mxu2 %vm335_vm2, %v2842_v26  ;;  %2268 = vmatmul.msk.f32.vlgmr.msrb.gmra.mxu3 %vm335_vm2, %v2842_v26 }
 0x14d   : > { %v2848_v27 = vpop.trf.xlu1 }
 0x14e   : > { %4523 = vst [vmem:[#allocation5_spill] sm:$0xff] %v2848_v27  ;;  %2236 = vmatmul.msk.f32.gmra.mxu2 %vm335_vm2, %v2848_v27  ;;  %2269 = vmatmul.msk.f32.gmra.mxu3 %vm335_vm2, %v2848_v27 }
 0x155   : > { %v2854_v28 = vpop.trf.xlu1 }
 0x156   : > { %4524 = vst [vmem:[#allocation6_spill] sm:$0xff] %v2854_v28  ;;  %2237 = vmatmul.msk.f32.gmra.mxu2 %vm335_vm2, %v2854_v28  ;;  %2270 = vmatmul.msk.f32.gmra.mxu3 %vm335_vm2, %v2854_v28 }
 0x15d   : > { %v2860_v29 = vpop.trf.xlu1 }
 0x15e   : > { %4525 = vst [vmem:[#allocation7_spill] sm:$0xff] %v2860_v29  ;;  %2238 = vmatmul.msk.f32.gmra.mxu2 %vm335_vm2, %v2860_v29  ;;  %2271 = vmatmul.msk.f32.gmra.mxu3 %vm335_vm2, %v2860_v29 }
 0x165   : > { %v2866_v30 = vpop.trf.xlu1 }
 0x166   : > { %4526 = vst [vmem:[#allocation8_spill] sm:$0xff] %v2866_v30  ;;  %2239 = vmatmul.msk.f32.gmra.mxu2 %vm335_vm2, %v2866_v30  ;;  %2272 = vmatmul.msk.f32.gmra.mxu3 %vm335_vm2, %v2866_v30 }
 0x16d   : > { %v2872_v31 = vpop.trf.xlu1 }
 0x16e   : > { %4527 = vst [vmem:[#allocation9_spill] sm:$0xff] %v2872_v31  ;;  %2240 = vmatmul.msk.f32.gmra.mxu2 %vm335_vm2, %v2872_v31  ;;  %2273 = vmatmul.msk.f32.gmra.mxu3 %vm335_vm2, %v2872_v31 }
 0x175   : > { %v2878_v32 = vpop.trf.xlu1 }
 0x176   : > { %4528 = vst [vmem:[#allocation10_spill] sm:$0xff] %v2878_v32  ;;  %2241 = vmatmul.msk.f32.gmra.mxu2 %vm335_vm2, %v2878_v32  ;;  %2274 = vmatmul.msk.f32.gmra.mxu3 %vm335_vm2, %v2878_v32 }
 0x17d   : > { %v2884_v33 = vpop.trf.xlu1 }
 0x17e   : > { %4529 = vst [vmem:[#allocation11_spill] sm:$0xff] %v2884_v33  ;;  %2242 = vmatmul.msk.f32.gmra.mxu2 %vm335_vm2, %v2884_v33  ;;  %2275 = vmatmul.msk.f32.gmra.mxu3 %vm335_vm2, %v2884_v33 }
 0x185   : > { %v2890_v34 = vpop.trf.xlu1 }
 0x186   : > { %4530 = vst [vmem:[#allocation12_spill] sm:$0xff] %v2890_v34  ;;  %2243 = vmatmul.msk.f32.gmra.mxu2 %vm335_vm2, %v2890_v34  ;;  %2276 = vmatmul.msk.f32.gmra.mxu3 %vm335_vm2, %v2890_v34 }
 0x18d   : > { %v2896_v35 = vpop.trf.xlu1 }
 0x18e   : > { %4531 = vst [vmem:[#allocation13_spill] sm:$0xff] %v2896_v35  ;;  %2244 = vmatmul.msk.f32.gmra.mxu2 %vm335_vm2, %v2896_v35  ;;  %2277 = vmatmul.msk.f32.gmra.mxu3 %vm335_vm2, %v2896_v35 }
 0x195   : > { %v2902_v36 = vpop.trf.xlu1 }
 0x196   : > { %4532 = vst [vmem:[#allocation14_spill] sm:$0xff] %v2902_v36  ;;  %2245 = vmatmul.msk.f32.gmra.mxu2 %vm335_vm2, %v2902_v36  ;;  %2278 = vmatmul.msk.f32.gmra.mxu3 %vm335_vm2, %v2902_v36 }
 0x19d   : > { %v2908_v37 = vpop.trf.xlu1 }
 0x19e   : > { %4533 = vst [vmem:[#allocation15_spill] sm:$0xff] %v2908_v37  ;;  %2246 = vmatmul.msk.f32.gmra.mxu2 %vm335_vm2, %v2908_v37  ;;  %2279 = vmatmul.msk.f32.gmra.mxu3 %vm335_vm2, %v2908_v37 }
 0x1a5   : > { %v2914_v38 = vpop.trf.xlu1 }
 0x1a6   : > { %4534 = vst [vmem:[#allocation16_spill] sm:$0xff] %v2914_v38  ;;  %2247 = vmatmul.msk.f32.gmra.mxu2 %vm335_vm2, %v2914_v38  ;;  %2280 = vmatmul.msk.f32.gmra.mxu3 %vm335_vm2, %v2914_v38 }
 0x1ad   : > { %v2920_v39 = vpop.trf.xlu1 }
 0x1ae   : > { %4535 = vst [vmem:[#allocation17_spill] sm:$0xff] %v2920_v39  ;;  %2248 = vmatmul.msk.f32.gmra.mxu2 %vm335_vm2, %v2920_v39  ;;  %2281 = vmatmul.msk.f32.gmra.mxu3 %vm335_vm2, %v2920_v39 }
 0x1b5   : > { %v2926_v40 = vpop.trf.xlu1 }
 0x1b6   : > { %4536 = vst [vmem:[#allocation18_spill] sm:$0xff] %v2926_v40  ;;  %2249 = vmatmul.msk.f32.gmra.mxu2 %vm335_vm2, %v2926_v40  ;;  %2282 = vmatmul.msk.f32.gmra.mxu3 %vm335_vm2, %v2926_v40 }
 0x1bd   : > { %v2932_v41 = vpop.trf.xlu1 }
 0x1be   : > { %2250 = vmatmul.msk.f32.gmra.mxu2 %vm335_vm2, %v2932_v41  ;;  %2283 = vmatmul.msk.f32.gmra.mxu3 %vm335_vm2, %v2932_v41 }
 0x1c5   : > { %v2942_v44 = vpop.trf.xlu1 }
 0x1c6   : > { %4539 = vst [vmem:[#allocation21_spill] sm:$0xff] %v2942_v44  ;;  %2251 = vmatmul.msk.f32.gmra.mxu2 %vm335_vm2, %v2942_v44  ;;  %2284 = vmatmul.msk.f32.gmra.mxu3 %vm335_vm2, %v2942_v44 }
 0x1c9   : > { %v2948_v45 = vpop.f32.mrf.mxu2  ;;  %v2950_v46 = vpop.f32.mrf.mxu3 }
 0x1cd   : > { %v2952_v47 = vpop.trf.xlu1 }
 0x1ce   : > { %4540 = vst [vmem:[#allocation22_spill] sm:$0xff] %v2952_v47  ;;  %2252 = vmatmul.msk.f32.gmra.mxu2 %vm335_vm2, %v2952_v47  ;;  %2285 = vmatmul.msk.f32.gmra.mxu3 %vm335_vm2, %v2952_v47 }
 0x1d1   : > { %v2958_v48 = vpop.f32.mrf.mxu2  ;;  %v2960_v49 = vpop.f32.mrf.mxu3 }
 0x1d2   : > { %v667_v50 = vmax.f32 %v2958_v48, %v2960_v49 }
 0x1d4   : > { %668 = vmax.xlane.f32.xlu0 %v667_v50 }
 0x1d5   : > { %v2964_v51 = vpop.trf.xlu1 }
 0x1d6   : > { %4541 = vst [vmem:[#allocation23_spill] sm:$0xff] %v2964_v51  ;;  %2253 = vmatmul.msk.f32.gmra.mxu2 %vm335_vm2, %v2964_v51  ;;  %2286 = vmatmul.msk.f32.gmra.mxu3 %vm335_vm2, %v2964_v51 }
 0x1d9   : > { %v2970_v52 = vpop.f32.mrf.mxu2  ;;  %v2972_v53 = vpop.f32.mrf.mxu3 }
 0x1da   : > { %v670_v54 = vmax.f32 %v2970_v52, %v2972_v53 }
 0x1dc   : > { %671 = vmax.xlane.f32.xlu2 %v670_v54 }
 0x1dd   : > { %v2976_v55 = vpop.trf.xlu1 }
 0x1de   : > { %4542 = vst [vmem:[#allocation24_spill] sm:$0xff] %v2976_v55  ;;  %2254 = vmatmul.msk.f32.gmra.mxu2 %vm335_vm2, %v2976_v55  ;;  %2287 = vmatmul.msk.f32.gmra.mxu3 %vm335_vm2, %v2976_v55 }
 0x1e1   : > { %v2982_v56 = vpop.f32.mrf.mxu2  ;;  %v2984_v57 = vpop.f32.mrf.mxu3 }
 0x1e2   : > { %v673_v58 = vmax.f32 %v2982_v56, %v2984_v57 }
 0x1e4   : > { %674 = vmax.xlane.f32.xlu2 %v673_v58 }
 0x1e5   : > { %v2988_v59 = vpop.trf.xlu1 }
 0x1e6   : > { %4543 = vst [vmem:[#allocation25_spill] sm:$0xff] %v2988_v59  ;;  %2255 = vmatmul.msk.f32.gmra.mxu2 %vm335_vm2, %v2988_v59  ;;  %2288 = vmatmul.msk.f32.gmra.mxu3 %vm335_vm2, %v2988_v59 }
 0x1e9   : > { %v2994_v60 = vpop.f32.mrf.mxu2  ;;  %v2996_v61 = vpop.f32.mrf.mxu3 }
 0x1ea   : > { %v676_v62 = vmax.f32 %v2994_v60, %v2996_v61 }
 0x1ec   : > { %677 = vmax.xlane.f32.xlu2 %v676_v62 }
 0x1ed   : > { %v3000_v63 = vpop.trf.xlu1 }
 0x1ee   : > { %4544 = vst [vmem:[#allocation26_spill] sm:$0xff] %v3000_v63  ;;  %2256 = vmatmul.msk.f32.gmra.mxu2 %vm335_vm2, %v3000_v63  ;;  %2289 = vmatmul.msk.f32.gmra.mxu3 %vm335_vm2, %v3000_v63 }
 0x1f1   : > { %v3006_v0 = vpop.f32.mrf.mxu2  ;;  %v3008_v1 = vpop.f32.mrf.mxu3 }
 0x1f2   : > { %v679_v2 = vmax.f32 %v3006_v0, %v3008_v1 }
 0x1f4   : > { %680 = vmax.xlane.f32.xlu2 %v679_v2 }
 0x1f5   : > { %v3012_v3 = vpop.trf.xlu1 }
 0x1f6   : > { %4545 = vst [vmem:[#allocation27_spill] sm:$0xff] %v3012_v3  ;;  %2257 = vmatmul.msk.f32.gmra.mxu2 %vm335_vm2, %v3012_v3  ;;  %2290 = vmatmul.msk.f32.gmra.mxu3 %vm335_vm2, %v3012_v3 }
 0x1f9   : > { %v3018_v4 = vpop.f32.mrf.mxu2  ;;  %v3020_v5 = vpop.f32.mrf.mxu3 }
 0x1fa   : > { %v682_v6 = vmax.f32 %v3018_v4, %v3020_v5 }
 0x1fc   : > { %683 = vmax.xlane.f32.xlu2 %v682_v6 }
 0x1fd   : > { %v3024_v7 = vpop.trf.xlu1 }
 0x1fe   : > { %2258 = vmatmul.msk.f32.gmra.mxu2 %vm335_vm2, %v3024_v7  ;;  %2291 = vmatmul.msk.f32.gmra.mxu3 %vm335_vm2, %v3024_v7 }
 0x201   : > { %v3030_v8 = vpop.f32.mrf.mxu2  ;;  %v3032_v9 = vpop.f32.mrf.mxu3 }
 0x202   : > { %v685_v10 = vmax.f32 %v3030_v8, %v3032_v9 }
 0x204   : > { %686 = vmax.xlane.f32.xlu2 %v685_v10 }
 0x205   : > { %v3036_v11 = vpop.trf.xlu1 }
 0x206   : > { %4546 = vst [vmem:[#allocation28_spill] sm:$0xff] %v3036_v11  ;;  %2259 = vmatmul.msk.f32.gmra.mxu2 %vm335_vm2, %v3036_v11  ;;  %2292 = vmatmul.msk.f32.gmra.mxu3 %vm335_vm2, %v3036_v11 }
 0x209   : > { %v3042_v12 = vpop.f32.mrf.mxu2  ;;  %v3044_v13 = vpop.f32.mrf.mxu3 }
 0x20a   : > { %v688_v14 = vmax.f32 %v3042_v12, %v3044_v13 }
 0x20c   : > { %689 = vmax.xlane.f32.xlu2 %v688_v14 }
 0x20d   : > { %v3048_v15 = vpop.trf.xlu1 }
 0x20e   : > { %4547 = vst [vmem:[#allocation29_spill] sm:$0xff] %v3048_v15  ;;  %2260 = vmatmul.msk.f32.gmra.mxu2 %vm335_vm2, %v3048_v15  ;;  %2293 = vmatmul.msk.f32.gmra.mxu3 %vm335_vm2, %v3048_v15 }
 0x211   : > { %v3054_v16 = vpop.f32.mrf.mxu2  ;;  %v3056_v17 = vpop.f32.mrf.mxu3 }
 0x212   : > { %v691_v18 = vmax.f32 %v3054_v16, %v3056_v17 }
 0x214   : > { %692 = vmax.xlane.f32.xlu2 %v691_v18 }
 0x215   : > { %v3060_v19 = vpop.trf.xlu1 }
 0x216   : > { %2261 = vmatmul.msk.f32.gmra.mxu2 %vm335_vm2, %v3060_v19  ;;  %2294 = vmatmul.msk.f32.gmra.mxu3 %vm335_vm2, %v3060_v19 }
 0x219   : > { %v3066_v20 = vpop.f32.mrf.mxu2  ;;  %v3068_v21 = vpop.f32.mrf.mxu3 }
 0x21a   : > { %v694_v24 = vmax.f32 %v3066_v20, %v3068_v21 }
 0x21c   : > { %695 = vmax.xlane.f32.xlu2 %v694_v24 }
 0x21d   : > { %v3072_v25 = vpop.trf.xlu1 }
 0x21e   : > { %4548 = vst [vmem:[#allocation30_spill] sm:$0xff] %v3072_v25  ;;  %2262 = vmatmul.msk.f32.gmra.mxu2 %vm335_vm2, %v3072_v25  ;;  %2295 = vmatmul.msk.f32.gmra.mxu3 %vm335_vm2, %v3072_v25 }
 0x221   : > { %v3078_v50 = vpop.f32.mrf.mxu2  ;;  %v3080_v54 = vpop.f32.mrf.mxu3 }
 0x222   : > { %v697_v58 = vmax.f32 %v3078_v50, %v3080_v54 }
 0x224   : > { %698 = vmax.xlane.f32.xlu2 %v697_v58 }
 0x225   : > { %v3084_v62 = vpop.trf.xlu1 }
 0x226   : > { %4549 = vst [vmem:[#allocation31_spill] sm:$0xff] %v3084_v62  ;;  %2263 = vmatmul.msk.f32.gmra.mxu2 %vm335_vm2, %v3084_v62  ;;  %2296 = vmatmul.msk.f32.gmra.mxu3 %vm335_vm2, %v3084_v62  ;;  %v664_v62 = vmax.f32 %v2948_v45, %v2950_v46 }
 0x229   : > { %v3090_v2 = vpop.f32.mrf.mxu2  ;;  %v3092_v6 = vpop.f32.mrf.mxu3 }
 0x22a   : > { %v700_v10 = vmax.f32 %v3090_v2, %v3092_v6 }
 0x22c   : > { %701 = vmax.xlane.f32.xlu2 %v700_v10 }
 0x22d   : > { %v3096_v14 = vpop.trf.xlu1 }
 0x22e   : > { %2264 = vmatmul.msk.f32.gmra.mxu2 %vm335_vm2, %v3096_v14  ;;  %2297 = vmatmul.msk.f32.gmra.mxu3 %vm335_vm2, %v3096_v14 }
 0x231   : > { %v3102_v18 = vpop.f32.mrf.mxu2  ;;  %v3104_v24 = vpop.f32.mrf.mxu3 }
 0x232   : > { %v703_v58 = vmax.f32 %v3102_v18, %v3104_v24 }
 0x234   : > { %704 = vmax.xlane.f32.xlu0 %v703_v58 }
 0x235   : > { %v3108_v23 = vpop.trf.xlu1 }
 0x236   : > { %4550 = vst [vmem:[#allocation32_spill] sm:$0xff] %v3108_v23  ;;  %2265 = vmatmul.msk.f32.gmra.mxu2 %vm335_vm2, %v3108_v23  ;;  %2298 = vmatmul.msk.f32.gmra.mxu3 %vm335_vm2, %v3108_v23 }
 0x239   : > { %v3114_v10 = vpop.f32.mrf.mxu2  ;;  %v3116_v22 = vpop.f32.mrf.mxu3 }
 0x23a   : > { %v706_v15 = vmax.f32 %v3114_v10, %v3116_v22 }
 0x23c   : > { %665 = vmax.xlane.f32.xlu0 %v664_v62  ;;  %707 = vmax.xlane.f32.xlu2 %v706_v15 }
 0x23d   : > { %v3122_v58 = vpop.trf.xlu1 }
 0x23e   : > { %4551 = vst [vmem:[#allocation33_spill] sm:$0xff] %v3122_v58  ;;  %2266 = vmatmul.msk.f32.gmra.mxu2 %vm335_vm2, %v3122_v58  ;;  %2299 = vmatmul.msk.f32.gmra.mxu3 %vm335_vm2, %v3122_v58 }
 0x241   : > { %v3128_v3 = vpop.f32.mrf.mxu2  ;;  %v3130_v59 = vpop.f32.mrf.mxu3 }
 0x242   : > { %v709_v51 = vmax.f32 %v3128_v3, %v3130_v59 }
 0x244   : > { %710 = vmax.xlane.f32.xlu2 %v709_v51 }
 0x249   : > { %v3134_v44 = vpop.f32.mrf.mxu2  ;;  %v3136_v62 = vpop.f32.mrf.mxu3 }
 0x24a   : > { %4552 = vst [vmem:[#allocation34_spill] sm:$0xff] %v3134_v44  ;;  %v712_v33 = vmax.f32 %v3134_v44, %v3136_v62 }
 0x24b   : > { %4553 = vst [vmem:[#allocation35_spill] sm:$0xff] %v3136_v62 }
 0x24f   : > { %v3138_v15 = vpop.xlane.xlu2 %671 }
 0x251   : > { %v3140_v43 = vpop.f32.mrf.mxu2  ;;  %v3142_v42 = vpop.f32.mrf.mxu3 }
 0x252   : > { %v715_v58 = vmax.f32 %v3140_v43, %v3142_v42 }
 0x254   : > { %716 = vmax.xlane.f32.xlu0 %v715_v58 }
 0x257   : > { %v3146_v39 = vpop.xlane.xlu2 %674 }
 0x259   : > { %v3148_v23 = vpop.f32.mrf.mxu2  ;;  %v3150_v37 = vpop.f32.mrf.mxu3 }
 0x25a   : > { %4554 = vst [vmem:[#allocation36_spill] sm:$0xff] %v3148_v23  ;;  %v718_v51 = vmax.f32 %v3148_v23, %v3150_v37 }
 0x25b   : > { %4555 = vst [vmem:[#allocation37_spill] sm:$0xff] %v3150_v37 }
 0x25c   : > { %719 = vmax.xlane.f32.xlu2 %v718_v51 }
 0x25f   : > { %v3154_v25 = vpop.xlane.xlu2 %677 }
 0x261   : > { %v3156_v35 = vpop.f32.mrf.mxu2  ;;  %v3158_v11 = vpop.f32.mrf.mxu3 }
 0x262   : > { %v721_v58 = vmax.f32 %v3156_v35, %v3158_v11 }
 0x264   : > { %713 = vmax.xlane.f32.xlu2 %v712_v33  ;;  %722 = vmax.xlane.f32.xlu1 %v721_v58 }
 0x267   : > { %v681_v63 = vpop.xlane.xlu2 %680 }
 0x268   : > { %v770_v31 = vsub.f32 %v3006_v0, %v681_v63  ;;  %v771_v55 = vsub.f32 %v3008_v1, %v681_v63 }
 0x269   : > { %v3166_v51 = vpop.f32.mrf.mxu2  ;;  %v3168_v29 = vpop.f32.mrf.mxu3 }
 0x26a   : > { %v724_v47 = vmax.f32 %v3166_v51, %v3168_v29  ;;  %v844_v26 = vmul.f32 1.442695, %v770_v31  ;;  %v846_v40 = vmul.f32 1.442695, %v771_v55 }
 0x26c   : > { %725 = vmax.xlane.f32.xlu0 %v724_v47  ;;  %2383 = vpow2.f32 %v844_v26 }
 0x26d   : > { %2385 = vpow2.f32 %v846_v40 }
 0x26f   : > { %v684_v38 = vpop.xlane.xlu2 %683 }
 0x270   : > { %v772_v31 = vsub.f32 %v3018_v4, %v684_v38  ;;  %v773_v47 = vsub.f32 %v3020_v5, %v684_v38 }
 0x271   : > { %v3172_v33 = vpop.f32.mrf.mxu2  ;;  %v3174_v58 = vpop.f32.mrf.mxu3 }
 0x272   : > { %v727_v63 = vmax.f32 %v3172_v33, %v3174_v58  ;;  %v3178_v0 = vpop.eup %2383  ;;  %v848_v34 = vmul.f32 1.442695, %v772_v31  ;;  %v850_v32 = vmul.f32 1.442695, %v773_v47 }
 0x273   : > { %4556 = vst [vmem:[#allocation38_spill] sm:$0xff] %v3178_v0  ;;  %v3180_v1 = vpop.eup %2385 }
 0x274   : > { %728 = vmax.xlane.f32.xlu0 %v727_v63  ;;  %4557 = vst [vmem:[#allocation39_spill] sm:$0xff] %v3180_v1  ;;  %v967_v40 = vadd.f32 %v3180_v1, %v3178_v0  ;;  %2387 = vpow2.f32 %v848_v34 }
 0x275   : > { %2389 = vpow2.f32 %v850_v32 }
 0x277   : > { %v687_v36 = vpop.xlane.xlu2 %686 }
 0x278   : > { %v775_v34 = vsub.f32 %v3032_v9, %v687_v36 }
 0x279   : > { %v3184_v55 = vpop.f32.mrf.mxu2  ;;  %v3186_v26 = vpop.f32.mrf.mxu3 }
 0x27a   : > { %v730_v4 = vmax.f32 %v3184_v55, %v3186_v26  ;;  %v3200_v31 = vpop.eup %2387  ;;  %v854_v30 = vmul.f32 1.442695, %v775_v34 }
 0x27b   : > { %4558 = vst [vmem:[#allocation40_spill] sm:$0xff] %v3200_v31  ;;  %v3202_v47 = vpop.eup %2389 }
 0x27c   : > { %968 = vadd.xlane.f32.xlu0 %v967_v40  ;;  %4559 = vst [vmem:[#allocation41_spill] sm:$0xff] %v3202_v47  ;;  %v970_v0 = vadd.f32 %v3202_v47, %v3200_v31 }
 0x27d   : > { %1260 = vrot.lane.b32.xlu1 %v2932_v41, %s2776_s28  ;;  %v774_v41 = vsub.f32 %v3030_v8, %v687_v36 }
 0x27f   : > { %v690_v63 = vpop.xlane.xlu2 %689 }
 0x280   : > { %v776_v34 = vsub.f32 %v3042_v12, %v690_v63 }
 0x281   : > { %v3194_v38 = vpop.f32.mrf.mxu2  ;;  %v3196_v5 = vpop.f32.mrf.mxu3 }
 0x282   : > { %v733_v8 = vmax.f32 %v3194_v38, %v3196_v5  ;;  %v856_v31 = vmul.f32 1.442695, %v776_v34 }
 0x284   : > { %731 = vmax.xlane.f32.xlu0 %v730_v4  ;;  %v852_v4 = vmul.f32 1.442695, %v774_v41 }
 0x285   : > { %1276 = vrot.lane.b32.xlu1 %v3024_v7, %s2776_s28 }
 0x286   : > { %2391 = vpow2.f32 %v852_v4  ;;  %v777_v4 = vsub.f32 %v3044_v13, %v690_v63 }
 0x287   : > { %v693_v40 = vpop.xlane.xlu2 %692  ;;  %2393 = vpow2.f32 %v854_v30 }
 0x288   : > { %2395 = vpow2.f32 %v856_v31 }
 0x289   : > { %v3206_v1 = vpop.f32.mrf.mxu2  ;;  %v3208_v32 = vpop.f32.mrf.mxu3 }
 0x28a   : > { %v736_v12 = vmax.f32 %v3206_v1, %v3208_v32 }
 0x28c   : > { %971 = vadd.xlane.f32.xlu0 %v970_v0  ;;  %v3224_v0 = vpop.eup %2391 }
 0x28d   : > { %1282 = vrot.lane.b32.xlu1 %v3060_v19, %s2776_s28  ;;  %4560 = vst [vmem:[#allocation42_spill] sm:$0xff] %v3224_v0  ;;  %v3226_v41 = vpop.eup %2393 }
 0x28e   : > { %4561 = vst [vmem:[#allocation43_spill] sm:$0xff] %v3226_v41  ;;  %v3246_v34 = vpop.eup %2395 }
 0x28f   : > { %v3214_v7 = vpop.xlane.xlu2 %695  ;;  %4562 = vst [vmem:[#allocation44_spill] sm:$0xff] %v3246_v34 }
 0x291   : > { %v3218_v36 = vpop.f32.mrf.mxu2  ;;  %v3220_v9 = vpop.f32.mrf.mxu3 }
 0x294   : > { %734 = vmax.xlane.f32.xlu0 %v733_v8  ;;  %v973_v8 = vadd.f32 %v3226_v41, %v3224_v0 }
 0x295   : > { %1288 = vrot.lane.b32.xlu1 %v3096_v14, %s2776_s28  ;;  %v858_v14 = vmul.f32 1.442695, %v777_v4 }
 0x297   : > { %v3228_v19 = vpop.xlane.xlu2 %698  ;;  %2397 = vpow2.f32 %v858_v14 }
 0x299   : > { %v3232_v47 = vpop.f32.mrf.mxu2  ;;  %v3234_v30 = vpop.f32.mrf.mxu3 }
 0x29c   : > { %974 = vadd.xlane.f32.xlu0 %v973_v8 }
 0x29d   : > { %v3248_v31 = vpop.eup %2397 }
 0x29e   : > { %4563 = vst [vmem:[#allocation45_spill] sm:$0xff] %v3248_v31 }
 0x29f   : > { %v702_v62 = vpop.xlane.xlu2 %701 }
 0x2a0   : > { %v784_v44 = vsub.f32 %v3090_v2, %v702_v62  ;;  %v785_v28 = vsub.f32 %v3092_v6, %v702_v62  ;;  %v778_v2 = vsub.f32 %v3054_v16, %v693_v40  ;;  %v779_v6 = vsub.f32 %v3056_v17, %v693_v40 }
 0x2a1   : > { %v3242_v13 = vpop.f32.mrf.mxu2  ;;  %v3244_v63 = vpop.f32.mrf.mxu3  ;;  %v739_v17 = vmax.f32 %v3218_v36, %v3220_v9 }
 0x2a2   : > { %v872_v37 = vmul.f32 1.442695, %v784_v44  ;;  %v874_v23 = vmul.f32 1.442695, %v785_v28  ;;  %v976_v28 = vadd.f32 %v3248_v31, %v3246_v34  ;;  %v862_v14 = vmul.f32 1.442695, %v779_v6 }
 0x2a3   : > { %v781_v31 = vsub.f32 %v3068_v21, %v3214_v7 }
 0x2a4   : > { %2399 = vpow2.f32 %v872_v37  ;;  %737 = vmax.xlane.f32.xlu0 %v736_v12 }
 0x2a5   : > { %2401 = vpow2.f32 %v874_v23  ;;  %v860_v23 = vmul.f32 1.442695, %v778_v2 }
 0x2a7   : > { %2403 = vpow2.f32 %v860_v23 }
 0x2a8   : > { %2405 = vpow2.f32 %v862_v14  ;;  %v780_v14 = vsub.f32 %v3066_v20, %v3214_v7  ;;  %v866_v20 = vmul.f32 1.442695, %v781_v31 }
 0x2a9   : > { %v3252_v62 = vpop.f32.mrf.mxu2  ;;  %v3254_v4 = vpop.f32.mrf.mxu3 }
 0x2aa   : > { %v3256_v8 = vpop.eup %2399 }
 0x2ab   : > { %v3260_v37 = vpop.eup %2401 }
 0x2ac   : > { %977 = vadd.xlane.f32.xlu0 %v976_v28  ;;  %v988_v44 = vadd.f32 %v3260_v37, %v3256_v8 }
 0x2ad   : > { %v3274_v6 = vpop.eup %2403 }
 0x2ae   : > { %989 = vadd.xlane.f32.xlu2 %v988_v44  ;;  %4564 = vst [vmem:[#allocation46_spill] sm:$0xff] %v3274_v6  ;;  %v3276_v23 = vpop.eup %2405 }
 0x2af   : > { %v708_v16 = vpop.xlane.xlu2 %707  ;;  %4565 = vst [vmem:[#allocation47_spill] sm:$0xff] %v3276_v23 }
 0x2b0   : > { %v788_v41 = vsub.f32 %v3114_v10, %v708_v16  ;;  %v789_v28 = vsub.f32 %v3116_v22, %v708_v16  ;;  %v979_v22 = vadd.f32 %v3276_v23, %v3274_v6  ;;  %v864_v16 = vmul.f32 1.442695, %v780_v14 }
 0x2b1   : > { %v3266_v40 = vpop.f32.mrf.mxu2  ;;  %v3268_v12 = vpop.f32.mrf.mxu3  ;;  %v782_v6 = vsub.f32 %v3078_v50, %v3228_v19 }
 0x2b2   : > { %v751_v2 = vmax.f32 %v3266_v40, %v3268_v12  ;;  %v880_v44 = vmul.f32 1.442695, %v788_v41  ;;  %v882_v0 = vmul.f32 1.442695, %v789_v28 }
 0x2b4   : > { %740 = vmax.xlane.f32.xlu0 %v739_v17  ;;  %2407 = vpow2.f32 %v880_v44  ;;  %v3290_v17 = vpop.xlane.xlu0 %668  ;;  %v742_v44 = vmax.f32 %v3232_v47, %v3234_v30 }
 0x2b5   : > { %2409 = vpow2.f32 %v882_v0 }
 0x2b6   : > { %752 = vmax.xlane.f32.xlu2 %v751_v2  ;;  %2411 = vpow2.f32 %v864_v16 }
 0x2b7   : > { %v711_v2 = vpop.xlane.xlu2 %710  ;;  %2413 = vpow2.f32 %v866_v20 }
 0x2b8   : > { %v790_v28 = vsub.f32 %v3128_v3, %v711_v2  ;;  %v791_v0 = vsub.f32 %v3130_v59, %v711_v2  ;;  %v783_v59 = vsub.f32 %v3080_v54, %v3228_v19  ;;  %v745_v54 = vmax.f32 %v3242_v13, %v3244_v63 }
 0x2b9   : > { %v3282_v10 = vpop.f32.mrf.mxu2  ;;  %v3284_v34 = vpop.f32.mrf.mxu3 }
 0x2ba   : > { %v754_v41 = vmax.f32 %v3282_v10, %v3284_v34  ;;  %v3292_v21 = vpop.eup %2407  ;;  %v886_v23 = vmul.f32 1.442695, %v791_v0  ;;  %v870_v0 = vmul.f32 1.442695, %v783_v59  ;;  %v768_v59 = vsub.f32 %v2994_v60, %v3154_v25 }
 0x2bb   : > { %v3294_v7 = vpop.eup %2409  ;;  %v748_v60 = vmax.f32 %v3252_v62, %v3254_v4 }
 0x2bc   : > { %980 = vadd.xlane.f32.xlu0 %v979_v22  ;;  %v994_v14 = vadd.f32 %v3294_v7, %v3292_v21  ;;  %v705_v31 = vpop.xlane.xlu0 %704  ;;  %v3302_v22 = vpop.eup %2411 }
 0x2bd   : > { %4566 = vst [vmem:[#allocation48_spill] sm:$0xff] %v3302_v22  ;;  %v3304_v16 = vpop.eup %2413 }
 0x2be   : > { %755 = vmax.xlane.f32.xlu2 %v754_v41  ;;  %v884_v41 = vmul.f32 1.442695, %v790_v28  ;;  %4567 = vst [vmem:[#allocation49_spill] sm:$0xff] %v3304_v16  ;;  %v982_v2 = vadd.f32 %v3304_v16, %v3302_v22  ;;  %v767_v16 = vsub.f32 %v2984_v57, %v3146_v39 }
 0x2c0   : > { %2415 = vpow2.f32 %v884_v41 }
 0x2c1   : > { %v3306_v20 = vpop.f32.mrf.mxu2  ;;  %v3308_v3 = vpop.f32.mrf.mxu3  ;;  %2417 = vpow2.f32 %v886_v23 }
 0x2c2   : > { %v757_v28 = vmax.f32 %v3306_v20, %v3308_v3 }
 0x2c4   : > { %743 = vmax.xlane.f32.xlu0 %v742_v44  ;;  %v868_v44 = vmul.f32 1.442695, %v782_v6 }
 0x2c6   : > { %995 = vadd.xlane.f32.xlu2 %v994_v14  ;;  %v3318_v14 = vpop.xlane.xlu0 %665  ;;  %v3320_v27 = vpop.eup %2415  ;;  %2419 = vpow2.f32 %v868_v44  ;;  %v840_v44 = vmul.f32 1.442695, %v768_v59 }
 0x2c7   : > { %v3322_v50 = vpop.eup %2417  ;;  %2421 = vpow2.f32 %v870_v0 }
 0x2c8   : > { %v997_v19 = vadd.f32 %v3322_v50, %v3320_v27  ;;  %2423 = vpow2.f32 %v840_v44 }
 0x2cc   : > { %983 = vadd.xlane.f32.xlu0 %v982_v2  ;;  %v3328_v23 = vpop.eup %2419  ;;  %v769_v2 = vsub.f32 %v2996_v61, %v3154_v25  ;;  %v838_v25 = vmul.f32 1.442695, %v767_v16 }
 0x2cd   : > { %v3330_v6 = vpop.eup %2421 }
 0x2ce   : > { %758 = vmax.xlane.f32.xlu2 %v757_v28  ;;  %v3332_v41 = vpop.xlane.xlu0 %716  ;;  %v985_v28 = vadd.f32 %v3330_v6, %v3328_v23  ;;  %v842_v0 = vmul.f32 1.442695, %v769_v2  ;;  %v3348_v22 = vpop.eup %2423 }
 0x2cf   : > { %4568 = vst [vmem:[#allocation50_spill] sm:$0xff] %v3348_v22 }
 0x2d0   : > { %2425 = vpow2.f32 %v842_v0 }
 0x2d4   : > { %746 = vmax.xlane.f32.xlu0 %v745_v54 }
 0x2d6   : > { %998 = vadd.xlane.f32.xlu2 %v997_v19  ;;  %v766_v19 = vsub.f32 %v2982_v56, %v3146_v39  ;;  %v3350_v59 = vpop.eup %2425  ;;  %v786_v56 = vsub.f32 %v3102_v18, %v705_v31 }
 0x2d7   : > { %4569 = vst [vmem:[#allocation51_spill] sm:$0xff] %v3350_v59  ;;  %v964_v39 = vadd.f32 %v3350_v59, %v3348_v22 }
 0x2d8   : > { %v836_v61 = vmul.f32 1.442695, %v766_v19  ;;  %v876_v57 = vmul.f32 1.442695, %v786_v56 }
 0x2da   : > { %2427 = vpow2.f32 %v836_v61 }
 0x2db   : > { %2429 = vpow2.f32 %v838_v25 }
 0x2dc   : > { %986 = vadd.xlane.f32.xlu0 %v985_v28  ;;  %v787_v28 = vsub.f32 %v3104_v24, %v705_v31  ;;  %2431 = vpow2.f32 %v876_v57 }
 0x2de   : > { %v878_v44 = vmul.f32 1.442695, %v787_v28 }
 0x2df   : > { %v3340_v54 = vpop.xlane.xlu0 %725 }
 0x2e0   : > { %v3358_v0 = vpop.eup %2427  ;;  %2433 = vpow2.f32 %v878_v44 }
 0x2e1   : > { %4570 = vst [vmem:[#allocation52_spill] sm:$0xff] %v3358_v0  ;;  %v3360_v16 = vpop.eup %2429 }
 0x2e2   : > { %4571 = vst [vmem:[#allocation53_spill] sm:$0xff] %v3360_v16  ;;  %v961_v18 = vadd.f32 %v3360_v16, %v3358_v0 }
 0x2e4   : > { %749 = vmax.xlane.f32.xlu0 %v748_v60  ;;  %v3366_v60 = vpop.eup %2431 }
 0x2e6   : > { %v3368_v24 = vpop.eup %2433 }
 0x2e7   : > { %v3352_v2 = vpop.xlane.xlu0 %728 }
 0x2ec   : > { %965 = vadd.xlane.f32.xlu0 %v964_v39  ;;  %v991_v39 = vadd.f32 %v3368_v24, %v3366_v60 }
 0x2ef   : > { %v3362_v19 = vpop.xlane.xlu0 %968 }
 0x2f0   : > { %4572 = vst [vmem:[#allocation54_spill] sm:$0xff] %v3362_v19 }
 0x2f4   : > { %962 = vadd.xlane.f32.xlu0 %v961_v18 }
 0x2f7   : > { %v732_v31 = vpop.xlane.xlu0 %731 }
 0x2f8   : > { %v804_v61 = vsub.f32 %v3184_v55, %v732_v31  ;;  %v805_v25 = vsub.f32 %v3186_v26, %v732_v31 }
 0x2fa   : > { %v912_v56 = vmul.f32 1.442695, %v804_v61  ;;  %v914_v28 = vmul.f32 1.442695, %v805_v25 }
 0x2fc   : > { %2435 = vpow2.f32 %v912_v56  ;;  %992 = vadd.xlane.f32.xlu0 %v991_v39  ;;  %v3384_v56 = vpop.xlane.xlu2 %719 }
 0x2fd   : > { %2437 = vpow2.f32 %v914_v28 }
 0x2ff   : > { %v3374_v57 = vpop.xlane.xlu0 %971 }
 0x302   : > { %v3376_v44 = vpop.eup %2435 }
 0x303   : > { %4573 = vst [vmem:[#allocation55_spill] sm:$0xff] %v3376_v44  ;;  %v3378_v18 = vpop.eup %2437 }
 0x304   : > { %4574 = vst [vmem:[#allocation56_spill] sm:$0xff] %v3378_v18  ;;  %v1018_v16 = vadd.f32 %v3378_v18, %v3376_v44 }
 0x306   : > { %1019 = vadd.xlane.f32.xlu2 %v1018_v16 }
 0x307   : > { %v735_v55 = vpop.xlane.xlu0 %734 }
 0x308   : > { %v806_v26 = vsub.f32 %v3194_v38, %v735_v55  ;;  %v807_v31 = vsub.f32 %v3196_v5, %v735_v55  ;;  %v3396_v55 = vpop.xlane.xlu2 %713 }
 0x30a   : > { %v916_v61 = vmul.f32 1.442695, %v806_v26  ;;  %v918_v25 = vmul.f32 1.442695, %v807_v31 }
 0x30c   : > { %2439 = vpow2.f32 %v916_v61 }
 0x30d   : > { %2441 = vpow2.f32 %v918_v25 }
 0x30f   : > { %v3386_v28 = vpop.xlane.xlu0 %974 }
 0x312   : > { %v3388_v39 = vpop.eup %2439 }
 0x313   : > { %4575 = vst [vmem:[#allocation57_spill] sm:$0xff] %v3388_v39  ;;  %v3390_v0 = vpop.eup %2441 }
 0x314   : > { %4576 = vst [vmem:[#allocation58_spill] sm:$0xff] %v3390_v0  ;;  %v1021_v16 = vadd.f32 %v3390_v0, %v3388_v39 }
 0x316   : > { %1022 = vadd.xlane.f32.xlu2 %v1021_v16 }
 0x317   : > { %v738_v18 = vpop.xlane.xlu0 %737 }
 0x318   : > { %v808_v38 = vsub.f32 %v3206_v1, %v738_v18  ;;  %v809_v5 = vsub.f32 %v3208_v32, %v738_v18 }
 0x31a   : > { %v920_v26 = vmul.f32 1.442695, %v808_v38  ;;  %v922_v31 = vmul.f32 1.442695, %v809_v5 }
 0x31c   : > { %2443 = vpow2.f32 %v920_v26 }
 0x31d   : > { %2445 = vpow2.f32 %v922_v31 }
 0x31f   : > { %v3398_v61 = vpop.xlane.xlu0 %977 }
 0x321   : > { %v3400_v25 = vpop.xlane.xlu2 %989 }
 0x322   : > { %v3402_v44 = vpop.eup %2443 }
 0x323   : > { %4577 = vst [vmem:[#allocation59_spill] sm:$0xff] %v3402_v44  ;;  %v3404_v59 = vpop.eup %2445 }
 0x324   : > { %4578 = vst [vmem:[#allocation60_spill] sm:$0xff] %v3404_v59  ;;  %v1024_v16 = vadd.f32 %v3404_v59, %v3402_v44  ;;  %v764_v59 = vsub.f32 %v2970_v52, %v3138_v15 }
 0x326   : > { %1025 = vadd.xlane.f32.xlu2 %v1024_v16 }
 0x327   : > { %v741_v1 = vpop.xlane.xlu0 %740 }
 0x328   : > { %v810_v32 = vsub.f32 %v3218_v36, %v741_v1  ;;  %v811_v18 = vsub.f32 %v3220_v9, %v741_v1  ;;  %v765_v9 = vsub.f32 %v2972_v53, %v3138_v15  ;;  %v762_v15 = vsub.f32 %v2958_v48, %v3290_v17 }
 0x329   : > { %v3410_v38 = vpop.xlane.xlu2 %752 }
 0x32a   : > { %v924_v5 = vmul.f32 1.442695, %v810_v32  ;;  %v926_v26 = vmul.f32 1.442695, %v811_v18 }
 0x32c   : > { %2447 = vpow2.f32 %v924_v5  ;;  %v832_v5 = vmul.f32 1.442695, %v764_v59 }
 0x32d   : > { %2449 = vpow2.f32 %v926_v26  ;;  %v834_v26 = vmul.f32 1.442695, %v765_v9  ;;  %v828_v9 = vmul.f32 1.442695, %v762_v15 }
 0x32f   : > { %v3412_v31 = vpop.xlane.xlu0 %980 }
 0x331   : > { %v756_v0 = vpop.xlane.xlu2 %755 }
 0x332   : > { %v3414_v39 = vpop.eup %2447  ;;  %v820_v16 = vsub.f32 %v3282_v10, %v756_v0  ;;  %v821_v36 = vsub.f32 %v3284_v34, %v756_v0 }
 0x333   : > { %v3420_v44 = vpop.eup %2449 }
 0x334   : > { %v944_v1 = vmul.f32 1.442695, %v820_v16  ;;  %v946_v32 = vmul.f32 1.442695, %v821_v36  ;;  %v1027_v18 = vadd.f32 %v3420_v44, %v3414_v39  ;;  %v763_v16 = vsub.f32 %v2960_v49, %v3290_v17 }
 0x336   : > { %2451 = vpow2.f32 %v944_v1  ;;  %1028 = vadd.xlane.f32.xlu2 %v1027_v18  ;;  %v760_v1 = vsub.f32 %v2948_v45, %v3318_v14 }
 0x337   : > { %2453 = vpow2.f32 %v946_v32  ;;  %v744_v52 = vpop.xlane.xlu0 %743  ;;  %v761_v32 = vsub.f32 %v2950_v46, %v3318_v14 }
 0x338   : > { %v812_v10 = vsub.f32 %v3232_v47, %v744_v52  ;;  %v813_v34 = vsub.f32 %v3234_v30, %v744_v52  ;;  %2455 = vpow2.f32 %v832_v5  ;;  %v824_v18 = vmul.f32 1.442695, %v760_v1 }
 0x339   : > { %v996_v0 = vpop.xlane.xlu2 %995  ;;  %2457 = vpow2.f32 %v834_v26  ;;  %v826_v45 = vmul.f32 1.442695, %v761_v32  ;;  %v795_v1 = vsub.f32 %v3142_v42, %v3332_v41 }
 0x33a   : > { %v928_v22 = vmul.f32 1.442695, %v812_v10  ;;  %v930_v19 = vmul.f32 1.442695, %v813_v34 }
 0x33c   : > { %v3428_v53 = vpop.eup %2451  ;;  %2459 = vpow2.f32 %v928_v22  ;;  %v830_v22 = vmul.f32 1.442695, %v763_v16 }
 0x33d   : > { %v3432_v59 = vpop.eup %2453  ;;  %2461 = vpow2.f32 %v930_v19 }
 0x33e   : > { %v1042_v47 = vadd.f32 %v3432_v59, %v3428_v53  ;;  %v3440_v36 = vpop.eup %2455  ;;  %2463 = vpow2.f32 %v828_v9  ;;  %v794_v9 = vsub.f32 %v3140_v43, %v3332_v41 }
 0x33f   : > { %v3438_v30 = vpop.xlane.xlu0 %983  ;;  %v3444_v48 = vpop.eup %2457  ;;  %2465 = vpow2.f32 %v830_v22 }
 0x340   : > { %1043 = vadd.xlane.f32.xlu0 %v1042_v47  ;;  %v958_v26 = vadd.f32 %v3444_v48, %v3440_v36  ;;  %2467 = vpow2.f32 %v824_v18 }
 0x341   : > { %v3448_v49 = vpop.xlane.xlu2 %758  ;;  %2469 = vpow2.f32 %v826_v45  ;;  %v894_v45 = vmul.f32 1.442695, %v795_v1 }
 0x342   : > { %v3450_v17 = vpop.eup %2459 }
 0x343   : > { %v3452_v19 = vpop.eup %2461 }
 0x344   : > { %v1030_v5 = vadd.f32 %v3452_v19, %v3450_v17  ;;  %v3460_v34 = vpop.eup %2463 }
 0x345   : > { %v3462_v47 = vpop.eup %2465 }
 0x346   : > { %1031 = vadd.xlane.f32.xlu2 %v1030_v5  ;;  %v892_v5 = vmul.f32 1.442695, %v794_v9  ;;  %v818_v9 = vsub.f32 %v3266_v40, %v3410_v38  ;;  %v822_v40 = vsub.f32 %v3306_v20, %v3448_v49  ;;  %v802_v20 = vsub.f32 %v3172_v33, %v3352_v2 }
 0x347   : > { %v747_v52 = vpop.xlane.xlu0 %746  ;;  %v800_v33 = vsub.f32 %v3166_v51, %v3340_v54 }
 0x348   : > { %959 = vadd.xlane.f32.xlu0 %v958_v26  ;;  %v814_v46 = vsub.f32 %v3242_v13, %v747_v52  ;;  %v815_v14 = vsub.f32 %v3244_v63, %v747_v52  ;;  %v3468_v13 = vpop.eup %2467  ;;  %v955_v63 = vadd.f32 %v3462_v47, %v3460_v34 }
 0x349   : > { %v999_v10 = vpop.xlane.xlu2 %998  ;;  %v3472_v22 = vpop.eup %2469 }
 0x34a   : > { %v932_v15 = vmul.f32 1.442695, %v814_v46  ;;  %v934_v16 = vmul.f32 1.442695, %v815_v14  ;;  %2471 = vrcp.f32 %v999_v10 }
 0x34b   : > { %2473 = vrcp.f32 %v996_v0 }
 0x34c   : > { %2475 = vpow2.f32 %v932_v15 }
 0x34d   : > { %2477 = vpow2.f32 %v934_v16 }
 0x34e   : > { %2479 = vpow2.f32 %v892_v5 }
 0x34f   : > { %v3474_v32 = vpop.xlane.xlu0 %986  ;;  %2481 = vpow2.f32 %v894_v45 }
 0x350   : > { %v2472_v18 = vpop.eup %2471  ;;  %956 = vadd.xlane.f32.xlu0 %v955_v63  ;;  %v819_v63 = vsub.f32 %v3268_v12, %v3410_v38  ;;  %v823_v12 = vsub.f32 %v3308_v3, %v3448_v49  ;;  %v908_v49 = vmul.f32 1.442695, %v802_v20 }
 0x351   : > { %v2474_v0 = vpop.eup %2473  ;;  %v1110_v43 = vmul.f32 %v2472_v18, %v3320_v27  ;;  %v1111_v26 = vmul.f32 %v2472_v18, %v3322_v50  ;;  %v952_v27 = vadd.f32 %v3472_v22, %v3468_v13  ;;  %v940_v18 = vmul.f32 1.442695, %v818_v9 }
 0x352   : > { %v3478_v42 = vpop.eup %2475  ;;  %v1108_v46 = vmul.f32 %v2474_v0, %v3292_v21  ;;  %v1109_v14 = vmul.f32 %v2474_v0, %v3294_v7  ;;  %v942_v5 = vmul.f32 1.442695, %v819_v63 }
 0x353   : > { %v3480_v41 = vpop.eup %2477  ;;  %1144 = vmatpush.xpose.msra.mxu0 %v1110_v43  ;;  %1164 = vmatpush.xpose.msra.mxu1 %v1111_v26  ;;  %v948_v43 = vmul.f32 1.442695, %v822_v40  ;;  %v950_v26 = vmul.f32 1.442695, %v823_v12 }
 0x354   : > { %v1033_v52 = vadd.f32 %v3480_v41, %v3478_v42  ;;  %v3490_v16 = vpop.eup %2479 }
 0x355   : > { %v3494_v7 = vpop.eup %2481 }
 0x356   : > { %1034 = vadd.xlane.f32.xlu2 %v1033_v52 }
 0x357   : > { %1145 = vmatpush.xpose.msra.mxu0 %v1108_v46  ;;  %1165 = vmatpush.xpose.msra.mxu1 %v1109_v14  ;;  %v750_v50 = vpop.xlane.xlu0 %749 }
 0x358   : > { %953 = vadd.xlane.f32.xlu0 %v952_v27  ;;  %v816_v10 = vsub.f32 %v3252_v62, %v750_v50  ;;  %v817_v15 = vsub.f32 %v3254_v4, %v750_v50  ;;  %v1003_v62 = vadd.f32 %v3494_v7, %v3490_v16  ;;  %v803_v27 = vsub.f32 %v3174_v58, %v3352_v2  ;;  %v186_v58 = vld [vmem:[%s4429_s2 + $0x10] sm:$0xff] }
 0x359   : > { %v801_v2 = vsub.f32 %v3168_v29, %v3340_v54 }
 0x35a   : > { %v936_v21 = vmul.f32 1.442695, %v816_v10  ;;  %v938_v1 = vmul.f32 1.442695, %v817_v15  ;;  %v910_v50 = vmul.f32 1.442695, %v803_v27 }
 0x35b   : > { %v4580_v27 = vld [vmem:[#allocation36_spill] sm:$0xff] }
 0x35c   : > { %2483 = vpow2.f32 %v936_v21 }
 0x35d   : > { %2485 = vpow2.f32 %v938_v1  ;;  %v904_v1 = vmul.f32 1.442695, %v800_v33 }
 0x35e   : > { %2487 = vpow2.f32 %v940_v18  ;;  %v723_v18 = vpop.xlane.xlu1 %722 }
 0x35f   : > { %v3500_v4 = vpop.xlane.xlu0 %965  ;;  %2489 = vpow2.f32 %v942_v5  ;;  %v798_v54 = vsub.f32 %v3156_v35, %v723_v18 }
 0x360   : > { %1004 = vadd.xlane.f32.xlu0 %v1003_v62  ;;  %2491 = vpow2.f32 %v948_v43  ;;  %v906_v62 = vmul.f32 1.442695, %v801_v2 }
 0x361   : > { %2493 = vpow2.f32 %v950_v26  ;;  %v900_v35 = vmul.f32 1.442695, %v798_v54 }
 0x362   : > { %v3502_v0 = vpop.eup %2483 }
 0x363   : > { %v3506_v45 = vpop.eup %2485 }
 0x364   : > { %v1036_v38 = vadd.f32 %v3506_v45, %v3502_v0  ;;  %v3514_v46 = vpop.eup %2487 }
 0x365   : > { %v3516_v14 = vpop.eup %2489 }
 0x366   : > { %1037 = vadd.xlane.f32.xlu2 %v1036_v38  ;;  %v1039_v3 = vadd.f32 %v3516_v14, %v3514_v46  ;;  %v3524_v15 = vpop.eup %2491 }
 0x367   : > { %v3512_v52 = vpop.xlane.xlu0 %962  ;;  %v3526_v9 = vpop.eup %2493 }
 0x368   : > { %v1045_v21 = vadd.f32 %v3526_v9, %v3524_v15 }
 0x36e   : > { %1040 = vadd.xlane.f32.xlu2 %v1039_v3  ;;  %v796_v3 = vsub.f32 %v4580_v27, %v3384_v56 }
 0x36f   : > { %v993_v10 = vpop.xlane.xlu0 %992 }
 0x370   : > { %2495 = vrcp.f32 %v993_v10 }
 0x371   : > { %2497 = vpow2.f32 %v908_v49 }
 0x372   : > { %2499 = vrcp.f32 %v3400_v25 }
 0x373   : > { %2501 = vpow2.f32 %v910_v50  ;;  %v4582_v50 = vld [vmem:[#allocation48_spill] sm:$0xff] }
 0x374   : > { %199 = vperm.xlu0 %2382, %v186_v58   ;;  %2503 = vrcp.f32 %v3474_v32  ;;  %v799_v32 = vsub.f32 %v3158_v11, %v723_v18  ;;  %v4584_v58 = vld [vmem:[#allocation6_spill] sm:$0xff]  ;;  %v4586_v18 = vld [vmem:[#allocation47_spill] sm:$0xff] }
 0x375   : > { %2505 = vpow2.f32 %v904_v1  ;;  %v4585_v1 = vld [vmem:[#allocation46_spill] sm:$0xff] }
 0x376   : > { %v2496_v63 = vpop.eup %2495  ;;  %1046 = vadd.xlane.f32.xlu2 %v1045_v21  ;;  %2507 = vrcp.f32 %v3438_v30  ;;  %v902_v11 = vmul.f32 1.442695, %v799_v32  ;;  %v896_v21 = vmul.f32 1.442695, %v796_v3  ;;  %v4594_v3 = vld [vmem:[#allocation43_spill] sm:$0xff] }
 0x377   : > { %v3539_v51 = vpop.eup %2497  ;;  %v1106_v5 = vmul.f32 %v2496_v63, %v3366_v60  ;;  %v1107_v25 = vmul.f32 %v2496_v63, %v3368_v24  ;;  %2509 = vpow2.f32 %v906_v62  ;;  %v4579_v24 = vld [vmem:[#allocation5_spill] sm:$0xff] }
 0x378   : > { %v2500_v40 = vpop.eup %2499  ;;  %2511 = vrcp.f32 %v3412_v31  ;;  %v4581_v31 = vld [vmem:[#allocation37_spill] sm:$0xff] }
 0x379   : > { %v3543_v29 = vpop.eup %2501  ;;  %1146 = vmatpush.xpose.msra.mxu0 %v1106_v5  ;;  %1166 = vmatpush.xpose.msra.mxu1 %v1107_v25  ;;  %v1104_v12 = vmul.f32 %v2500_v40, %v3256_v8  ;;  %v1105_v38 = vmul.f32 %v2500_v40, %v3260_v37  ;;  %2513 = vpow2.f32 %v900_v35  ;;  %v797_v49 = vsub.f32 %v4581_v31, %v3384_v56  ;;  %v4587_v40 = vld [vmem:[#allocation34_spill] sm:$0xff]  ;;  %v4591_v35 = vld [vmem:[#allocation8_spill] sm:$0xff] }
 0x37a   : > { %v2504_v60 = vpop.eup %2503  ;;  %v1015_v43 = vadd.f32 %v3543_v29, %v3539_v51  ;;  %2515 = vrcp.f32 %v3398_v61  ;;  %v792_v54 = vsub.f32 %v4587_v40, %v3396_v55  ;;  %v4600_v40 = vld [vmem:[#allocation50_spill] sm:$0xff] }
 0x37b   : > { %v3555_v30 = vpop.eup %2505  ;;  %v1102_v8 = vmul.f32 %v2504_v60, %v3328_v23  ;;  %v1103_v37 = vmul.f32 %v2504_v60, %v3330_v6  ;;  %2517 = vpow2.f32 %v902_v11  ;;  %v4583_v23 = vld [vmem:[#allocation49_spill] sm:$0xff]  ;;  %v898_v56 = vmul.f32 1.442695, %v797_v49 }
 0x37c   : > { %1232 = vrot.lane.b32.xlu0 %v4579_v24, %s2776_s28  ;;  %v2508_v26 = vpop.eup %2507  ;;  %2519 = vrcp.f32 %v3386_v28  ;;  %v4588_v28 = vld [vmem:[#allocation35_spill] sm:$0xff]  ;;  %v4590_v60 = vld [vmem:[#allocation45_spill] sm:$0xff] }
 0x37d   : > { %1147 = vmatpush.xpose.msra.mxu0 %v1104_v12  ;;  %1167 = vmatpush.xpose.msra.mxu1 %v1105_v38  ;;  %v3559_v20 = vpop.eup %2509  ;;  %v1100_v10 = vmul.f32 %v2508_v26, %v4582_v50  ;;  %v1101_v33 = vmul.f32 %v2508_v26, %v4583_v23  ;;  %2521 = vpow2.f32 %v896_v21  ;;  %v793_v32 = vsub.f32 %v4588_v28, %v3396_v55  ;;  %v4589_v12 = vld [vmem:[#allocation44_spill] sm:$0xff]  ;;  %v4593_v26 = vld [vmem:[#allocation42_spill] sm:$0xff]  ;;  %v4601_v28 = vld [vmem:[#allocation51_spill] sm:$0xff] }
 0x37e   : > { %1016 = vadd.xlane.f32.xlu2 %v1015_v43  ;;  %v2512_v6 = vpop.eup %2511  ;;  %v1012_v2 = vadd.f32 %v3559_v20, %v3555_v30  ;;  %2523 = vrcp.f32 %v3374_v57 }
 0x37f   : > { %v3573_v61 = vpop.eup %2513  ;;  %v1098_v63 = vmul.f32 %v2512_v6, %v4585_v1  ;;  %v1099_v62 = vmul.f32 %v2512_v6, %v4586_v18  ;;  %2525 = vpow2.f32 %v898_v56  ;;  %v890_v55 = vmul.f32 1.442695, %v793_v32 }
 0x380   : > { %v2516_v5 = vpop.eup %2515 }
 0x381   : > { %1148 = vmatpush.xpose.msra.mxu0 %v1102_v8  ;;  %1168 = vmatpush.xpose.msra.mxu1 %v1103_v37  ;;  %v3577_v25 = vpop.eup %2517  ;;  %v1096_v38 = vmul.f32 %v2516_v5, %v4589_v12  ;;  %v1097_v24 = vmul.f32 %v2516_v5, %v4590_v60  ;;  %v888_v8 = vmul.f32 1.442695, %v792_v54  ;;  %v4592_v37 = vld [vmem:[#allocation54_spill] sm:$0xff]  ;;  %v4603_v60 = vld [vmem:[#allocation52_spill] sm:$0xff] }
 0x382   : > { %v2520_v43 = vpop.eup %2519  ;;  %v1009_v11 = vadd.f32 %v3577_v25, %v3573_v61  ;;  %2527 = vrcp.f32 %v4592_v37  ;;  %v4606_v37 = vld [vmem:[#allocation16_spill] sm:$0xff] }
 0x383   : > { %v3591_v57 = vpop.eup %2521  ;;  %v1094_v27 = vmul.f32 %v2520_v43, %v4593_v26  ;;  %v1095_v31 = vmul.f32 %v2520_v43, %v4594_v3  ;;  %2529 = vpow2.f32 %v888_v8  ;;  %v4604_v43 = vld [vmem:[#allocation53_spill] sm:$0xff]  ;;  %v3621_v8 = vpop.xlane.xlu2 %1019  ;;  %v4608_v3 = vld [vmem:[#allocation4_spill] sm:$0xff] }
 0x384   : > { %1234 = vrot.lane.b32.xlu0 %v4584_v58, %s2776_s28  ;;  %v2524_v49 = vpop.eup %2523  ;;  %2531 = vrcp.f32 %v3500_v4  ;;  %v4598_v4 = vld [vmem:[#allocation38_spill] sm:$0xff] }
 0x385   : > { %1149 = vmatpush.xpose.msra.mxu0 %v1100_v10  ;;  %1169 = vmatpush.xpose.msra.mxu1 %v1101_v33  ;;  %v3595_v50 = vpop.eup %2525  ;;  %2533 = vpow2.f32 %v890_v55  ;;  %v4595_v10 = vld [vmem:[#allocation40_spill] sm:$0xff]  ;;  %v4596_v33 = vld [vmem:[#allocation41_spill] sm:$0xff] }
 0x386   : > { %1013 = vadd.xlane.f32.xlu2 %v1012_v2  ;;  %v1092_v23 = vmul.f32 %v2524_v49, %v4595_v10  ;;  %v1093_v6 = vmul.f32 %v2524_v49, %v4596_v33  ;;  %v4597_v2 = vld [vmem:[#allocation10_spill] sm:$0xff]  ;;  %v1006_v21 = vadd.f32 %v3595_v50, %v3591_v57  ;;  %2535 = vrcp.f32 %v3512_v52 }
 0x387   : > { %v4609_v10 = vld [vmem:[#allocation22_spill] sm:$0xff] }
 0x388   : > { %v2528_v58 = vpop.eup %2527 }
 0x389   : > { %1150 = vmatpush.xpose.msra.mxu0 %v1098_v63  ;;  %1170 = vmatpush.xpose.msra.mxu1 %v1099_v62  ;;  %v3605_v56 = vpop.eup %2529  ;;  %v1090_v1 = vmul.f32 %v2528_v58, %v4598_v4  ;;  %v4599_v63 = vld [vmem:[#allocation39_spill] sm:$0xff]  ;;  %v4611_v4 = vld [vmem:[#allocation24_spill] sm:$0xff] }
 0x38a   : > { %v1091_v18 = vmul.f32 %v2528_v58, %v4599_v63  ;;  %v2532_v62 = vpop.eup %2531 }
 0x38b   : > { %v3609_v5 = vpop.eup %2533  ;;  %v1088_v54 = vmul.f32 %v2532_v62, %v4600_v40  ;;  %v1089_v32 = vmul.f32 %v2532_v62, %v4601_v28  ;;  %v3625_v55 = vpop.xlane.xlu2 %1022 }
 0x38c   : > { %1238 = vrot.lane.b32.xlu0 %v4591_v35, %s2776_s28  ;;  %v2536_v12 = vpop.eup %2535  ;;  %v1000_v52 = vadd.f32 %v3609_v5, %v3605_v56 }
 0x38d   : > { %1151 = vmatpush.xpose.msra.mxu0 %v1096_v38  ;;  %1171 = vmatpush.xpose.msra.mxu1 %v1097_v24  ;;  %v4602_v38 = vld [vmem:[#allocation12_spill] sm:$0xff]  ;;  %v1086_v24 = vmul.f32 %v2536_v12, %v4603_v60  ;;  %v1087_v35 = vmul.f32 %v2536_v12, %v4604_v43  ;;  %v4617_v60 = vld [vmem:[#allocation30_spill] sm:$0xff]  ;;  %v4618_v43 = vld [vmem:[#allocation15_spill] sm:$0xff] }
 0x38e   : > { %1010 = vadd.xlane.f32.xlu2 %v1009_v11  ;;  %v4605_v11 = vld [vmem:[#allocation14_spill] sm:$0xff] }
 0x391   : > { %1152 = vmatpush.xpose.msra.mxu0 %v1094_v27  ;;  %1172 = vmatpush.xpose.msra.mxu1 %v1095_v31  ;;  %v4607_v27 = vld [vmem:[#allocation18_spill] sm:$0xff] }
 0x394   : > { %1242 = vrot.lane.b32.xlu0 %v4597_v2, %s2776_s28 }
 0x395   : > { %1153 = vmatpush.xpose.msra.mxu0 %v1092_v23  ;;  %1173 = vmatpush.xpose.msra.mxu1 %v1093_v6  ;;  %v4610_v23 = vld [vmem:[#allocation7_spill] sm:$0xff] }
 0x396   : > { %1007 = vadd.xlane.f32.xlu2 %v1006_v21 }
 0x399   : > { %1154 = vmatpush.xpose.msra.mxu0 %v1090_v1  ;;  %1174 = vmatpush.xpose.msra.mxu1 %v1091_v18  ;;  %v3631_v31 = vpop.xlane.xlu2 %1025  ;;  %v4612_v1 = vld [vmem:[#allocation9_spill] sm:$0xff] }
 0x39c   : > { %1246 = vrot.lane.b32.xlu0 %v4602_v38, %s2776_s28 }
 0x39d   : > { %1155 = vmatpush.xpose.msra.mxu0 %v1088_v54  ;;  %1175 = vmatpush.xpose.msra.mxu1 %v1089_v32 }
 0x39e   : > { %1001 = vadd.xlane.f32.xlu2 %v1000_v52  ;;  %v4615_v52 = vld [vmem:[#allocation28_spill] sm:$0xff] }
 0x3a1   : > { %1156 = vmatpush.xpose.msra.mxu0 %v1086_v24  ;;  %1176 = vmatpush.xpose.msra.mxu1 %v1087_v35 }
 0x3a4   : > { %1250 = vrot.lane.b32.xlu0 %v4605_v11, %s2776_s28  ;;  %v4620_v11 = vld [vmem:[#allocation17_spill] sm:$0xff] }
 0x3a9   : > { %v3637_v33 = vpop.xlane.xlu2 %1028 }
 0x3ac   : > { %1254 = vrot.lane.b32.xlu0 %v4606_v37, %s2776_s28  ;;  %v4621_v37 = vld [vmem:[#allocation19_spill] sm:$0xff] }
 0x3b3   : > { %v1044_v26 = vpop.xlane.xlu0 %1043 }
 0x3b4   : > { %1258 = vrot.lane.b32.xlu0 %v4607_v27, %s2776_s28 }
 0x3b6   : > { %1230 = vrot.lane.b32.xlu2 %v4608_v3, %s2776_s28  ;;  %v4623_v3 = vld [vmem:[#allocation20_spill] sm:$0xff] }
 0x3b9   : > { %v1032_v63 = vpop.xlane.xlu2 %1031 }
 0x3bb   : > { %v960_v49 = vpop.xlane.xlu0 %959 }
 0x3bc   : > { %2537 = vrcp.f32 %v960_v49  ;;  %1264 = vrot.lane.b32.xlu0 %v4609_v10, %s2776_s28 }
 0x3be   : > { %1236 = vrot.lane.b32.xlu2 %v4610_v23, %s2776_s28  ;;  %v4625_v23 = vld [vmem:[#allocation21_spill] sm:$0xff] }
 0x3c2   : > { %v2538_v6 = vpop.eup %2537 }
 0x3c3   : > { %v957_v58 = vpop.xlane.xlu0 %956  ;;  %v1084_v2 = vmul.f32 %v2538_v6, %v3440_v36  ;;  %v1085_v21 = vmul.f32 %v2538_v6, %v3444_v48  ;;  %v4613_v36 = vld [vmem:[#allocation26_spill] sm:$0xff]  ;;  %v4614_v48 = vld [vmem:[#allocation11_spill] sm:$0xff] }
 0x3c4   : > { %2539 = vrcp.f32 %v957_v58  ;;  %1268 = vrot.lane.b32.xlu0 %v4611_v4, %s2776_s28 }
 0x3c5   : > { %1157 = vmatpush.xpose.msra.mxu0 %v1084_v2  ;;  %1177 = vmatpush.xpose.msra.mxu1 %v1085_v21 }
 0x3c6   : > { %1240 = vrot.lane.b32.xlu2 %v4612_v1, %s2776_s28 }
 0x3c9   : > { %v1035_v28 = vpop.xlane.xlu2 %1034 }
 0x3ca   : > { %v2540_v18 = vpop.eup %2539 }
 0x3cb   : > { %v954_v62 = vpop.xlane.xlu0 %953  ;;  %v1082_v40 = vmul.f32 %v2540_v18, %v3460_v34  ;;  %v1083_v54 = vmul.f32 %v2540_v18, %v3462_v47  ;;  %v4616_v34 = vld [vmem:[#allocation13_spill] sm:$0xff] }
 0x3cc   : > { %2541 = vrcp.f32 %v954_v62  ;;  %1272 = vrot.lane.b32.xlu0 %v4613_v36, %s2776_s28  ;;  %v4627_v36 = vld [vmem:[#allocation25_spill] sm:$0xff] }
 0x3cd   : > { %1158 = vmatpush.xpose.msra.mxu0 %v1082_v40  ;;  %1178 = vmatpush.xpose.msra.mxu1 %v1083_v54 }
 0x3ce   : > { %1244 = vrot.lane.b32.xlu2 %v4614_v48, %s2776_s28 }
 0x3d2   : > { %v2542_v32 = vpop.eup %2541 }
 0x3d3   : > { %v1080_v12 = vmul.f32 %v2542_v32, %v3468_v13  ;;  %v1081_v38 = vmul.f32 %v2542_v32, %v3472_v22  ;;  %v3659_v24 = vpop.xlane.xlu0 %1004  ;;  %v4619_v22 = vld [vmem:[#allocation32_spill] sm:$0xff]  ;;  %v4628_v32 = vld [vmem:[#allocation27_spill] sm:$0xff] }
 0x3d4   : > { %1278 = vrot.lane.b32.xlu0 %v4615_v52, %s2776_s28 }
 0x3d5   : > { %1159 = vmatpush.xpose.msra.mxu0 %v1080_v12  ;;  %1179 = vmatpush.xpose.msra.mxu1 %v1081_v38  ;;  %v4630_v12 = vld [vmem:[#allocation60_spill] sm:$0xff] }
 0x3d6   : > { %1248 = vrot.lane.b32.xlu2 %v4616_v34, %s2776_s28  ;;  %v4631_v34 = vld [vmem:[#allocation29_spill] sm:$0xff] }
 0x3d9   : > { %v1038_v47 = vpop.xlane.xlu2 %1037 }
 0x3dc   : > { %1284 = vrot.lane.b32.xlu0 %v4617_v60, %s2776_s28 }
 0x3de   : > { %1252 = vrot.lane.b32.xlu2 %v4618_v43, %s2776_s28 }
 0x3e1   : > { %v1041_v13 = vpop.xlane.xlu2 %1040 }
 0x3e4   : > { %1290 = vrot.lane.b32.xlu0 %v4619_v22, %s2776_s28 }
 0x3e6   : > { %v200_v35 = vpop.permute.xlu0 %199  ;;  %1256 = vrot.lane.b32.xlu2 %v4620_v11, %s2776_s28  ;;  %v4636_v11 = vld [vmem:[#allocation31_spill] sm:$0xff] }
 0x3e7   : > { %v3668_v27 = vadd.f32 %v4621_v37, %v200_v35  ;;  %v3671_v49 = vadd.f32 %v4623_v3, %v200_v35 }
 0x3e9   : > { %4622 = vst [vmem:[#allocation5_spill] sm:$0xff] %v3668_v27  ;;  %1160 = vmatmul.f32.vlgmr.msra.gmra.mxu0 %v3668_v27  ;;  %1180 = vmatmul.f32.vlgmr.msra.gmra.mxu1 %v3671_v49  ;;  %v1047_v10 = vpop.xlane.xlu2 %1046 }
 0x3ea   : > { %4624 = vst [vmem:[#allocation36_spill] sm:$0xff] %v3671_v49  ;;  %2543 = vrcp.f32 %v1047_v10 }
 0x3eb   : > { %2545 = vrcp.f32 %v1044_v26  ;;  %v4626_v26 = vld [vmem:[#allocation23_spill] sm:$0xff] }
 0x3ec   : > { %2547 = vrcp.f32 %v1041_v13  ;;  %v4635_v13 = vld [vmem:[#allocation56_spill] sm:$0xff] }
 0x3ed   : > { %2549 = vrcp.f32 %v1038_v47 }
 0x3ee   : > { %1262 = vrot.lane.b32.xlu2 %v4625_v23, %s2776_s28  ;;  %2551 = vrcp.f32 %v1035_v28 }
 0x3ef   : > { %2553 = vrcp.f32 %v1032_v63 }
 0x3f0   : > { %v2544_v6 = vpop.eup %2543  ;;  %2555 = vrcp.f32 %v3637_v33 }
 0x3f1   : > { %v1142_v58 = vmul.f32 %v2544_v6, %v3524_v15  ;;  %v1143_v2 = vmul.f32 %v2544_v6, %v3526_v9  ;;  %v2546_v21 = vpop.eup %2545  ;;  %v1017_v62 = vpop.xlane.xlu2 %1016  ;;  %2557 = vrcp.f32 %v3631_v31  ;;  %v4629_v31 = vld [vmem:[#allocation59_spill] sm:$0xff] }
 0x3f2   : > { %v1140_v4 = vmul.f32 %v2546_v21, %v3428_v53  ;;  %v1141_v1 = vmul.f32 %v2546_v21, %v3432_v59  ;;  %v2548_v18 = vpop.eup %2547  ;;  %2559 = vrcp.f32 %v3625_v55  ;;  %v4637_v21 = vld [vmem:[#allocation33_spill] sm:$0xff] }
 0x3f3   : > { %1184 = vmatpush.xpose.msrb.mxu0 %v1142_v58  ;;  %1204 = vmatpush.xpose.msrb.mxu1 %v1143_v2  ;;  %v1138_v15 = vmul.f32 %v2548_v18, %v3514_v46  ;;  %v1139_v9 = vmul.f32 %v2548_v18, %v3516_v14  ;;  %v2550_v40 = vpop.eup %2549  ;;  %2561 = vrcp.f32 %v3621_v8  ;;  %v4634_v8 = vld [vmem:[#allocation55_spill] sm:$0xff] }
 0x3f4   : > { %v1136_v53 = vmul.f32 %v2550_v40, %v3502_v0  ;;  %v1137_v59 = vmul.f32 %v2550_v40, %v3506_v45  ;;  %v2552_v54 = vpop.eup %2551  ;;  %2563 = vrcp.f32 %v1017_v62  ;;  %v4639_v40 = vld [vmem:[#allocation3_spill] sm:$0xff] }
 0x3f5   : > { %v1134_v46 = vmul.f32 %v2552_v54, %v3478_v42  ;;  %v1135_v14 = vmul.f32 %v2552_v54, %v3480_v41  ;;  %v2554_v48 = vpop.eup %2553 }
 0x3f6   : > { %1266 = vrot.lane.b32.xlu2 %v4626_v26, %s2776_s28  ;;  %v1132_v0 = vmul.f32 %v2554_v48, %v3450_v17  ;;  %v1133_v45 = vmul.f32 %v2554_v48, %v3452_v19  ;;  %v2556_v63 = vpop.eup %2555 }
 0x3f7   : > { %1185 = vmatpush.xpose.msrb.mxu0 %v1140_v4  ;;  %1205 = vmatpush.xpose.msrb.mxu1 %v1141_v1  ;;  %v1130_v42 = vmul.f32 %v2556_v63, %v3414_v39  ;;  %v1131_v41 = vmul.f32 %v2556_v63, %v3420_v44  ;;  %v2558_v33 = vpop.eup %2557  ;;  %v4632_v39 = vld [vmem:[#allocation57_spill] sm:$0xff]  ;;  %v4633_v44 = vld [vmem:[#allocation58_spill] sm:$0xff] }
 0x3f8   : > { %v1128_v19 = vmul.f32 %v2558_v33, %v4629_v31  ;;  %v1129_v38 = vmul.f32 %v2558_v33, %v4630_v12  ;;  %v2560_v52 = vpop.eup %2559 }
 0x3f9   : > { %v1014_v28 = vpop.xlane.xlu2 %1013  ;;  %v1126_v55 = vmul.f32 %v2560_v52, %v4632_v39  ;;  %v1127_v47 = vmul.f32 %v2560_v52, %v4633_v44  ;;  %v2562_v60 = vpop.eup %2561 }
 0x3fa   : > { %2565 = vrcp.f32 %v1014_v28  ;;  %v1124_v43 = vmul.f32 %v2562_v60, %v4634_v8  ;;  %v1125_v22 = vmul.f32 %v2562_v60, %v4635_v13  ;;  %v2564_v35 = vpop.eup %2563 }
 0x3fb   : > { %1186 = vmatpush.xpose.msrb.mxu0 %v1138_v15  ;;  %1206 = vmatpush.xpose.msrb.mxu1 %v1139_v9  ;;  %v1122_v3 = vmul.f32 %v2564_v35, %v3539_v51  ;;  %v1123_v10 = vmul.f32 %v2564_v35, %v3543_v29  ;;  %v4638_v15 = vld [vmem:[#allocation2_spill] sm:$0xff] }
 0x3fc   : > { %v1294_v9 = vrot.slane %v4638_v15, 4 }
 0x3fe   : > { %1270 = vrot.lane.b32.xlu2 %v4627_v36, %s2776_s28 }
 0x3ff   : > { %1187 = vmatpush.xpose.msrb.mxu0 %v1136_v53  ;;  %1207 = vmatpush.xpose.msrb.mxu1 %v1137_v59 }
 0x400   : > { %v2566_v23 = vpop.eup %2565 }
 0x401   : > { %v1011_v17 = vpop.xlane.xlu2 %1010  ;;  %v1120_v6 = vmul.f32 %v2566_v23, %v3555_v30  ;;  %v1121_v58 = vmul.f32 %v2566_v23, %v3559_v20 }
 0x402   : > { %2567 = vrcp.f32 %v1011_v17  ;;  %v1261_v17 = vpop.permute.xlu1 %1260 }
 0x403   : > { %1188 = vmatpush.xpose.msrb.mxu0 %v1134_v46  ;;  %1208 = vmatpush.xpose.msrb.mxu1 %v1135_v14 }
 0x406   : > { %1274 = vrot.lane.b32.xlu2 %v4628_v32, %s2776_s28 }
 0x407   : > { %1189 = vmatpush.xpose.msrb.mxu0 %v1132_v0  ;;  %1209 = vmatpush.xpose.msrb.mxu1 %v1133_v45 }
 0x408   : > { %v2568_v2 = vpop.eup %2567 }
 0x409   : > { %v1008_v37 = vpop.xlane.xlu2 %1007  ;;  %v1118_v51 = vmul.f32 %v2568_v2, %v3573_v61  ;;  %v1119_v29 = vmul.f32 %v2568_v2, %v3577_v25 }
 0x40a   : > { %2569 = vrcp.f32 %v1008_v37 }
 0x40b   : > { %1190 = vmatpush.xpose.msrb.mxu0 %v1130_v42  ;;  %1210 = vmatpush.xpose.msrb.mxu1 %v1131_v41  ;;  %2571 = vrcp.f32 %v3659_v24 }
 0x40e   : > { %1280 = vrot.lane.b32.xlu2 %v4631_v34, %s2776_s28 }
 0x40f   : > { %1191 = vmatpush.xpose.msrb.mxu0 %v1128_v19  ;;  %1211 = vmatpush.xpose.msrb.mxu1 %v1129_v38 }
 0x410   : > { %v2570_v1 = vpop.eup %2569 }
 0x411   : > { %v1002_v4 = vpop.xlane.xlu2 %1001  ;;  %v1116_v30 = vmul.f32 %v2570_v1, %v3591_v57  ;;  %v1117_v20 = vmul.f32 %v2570_v1, %v3595_v50  ;;  %v2572_v18 = vpop.eup %2571  ;;  %v1295_v57 = vrot.slane %v4639_v40, 4 }
 0x412   : > { %2573 = vrcp.f32 %v1002_v4  ;;  %v1114_v26 = vmul.f32 %v2572_v18, %v3490_v16  ;;  %v1115_v24 = vmul.f32 %v2572_v18, %v3494_v7  ;;  %v1233_v7 = vpop.permute.xlu0 %1232 }
 0x413   : > { %1192 = vmatpush.xpose.msrb.mxu0 %v1126_v55  ;;  %1212 = vmatpush.xpose.msrb.mxu1 %v1127_v47 }
 0x416   : > { %1286 = vrot.lane.b32.xlu2 %v4636_v11, %s2776_s28 }
 0x417   : > { %1193 = vmatpush.xpose.msrb.mxu0 %v1124_v43  ;;  %1213 = vmatpush.xpose.msrb.mxu1 %v1125_v22 }
 0x418   : > { %v2574_v62 = vpop.eup %2573 }
 0x419   : > { %v1112_v61 = vmul.f32 %v2574_v62, %v3605_v56  ;;  %v1113_v25 = vmul.f32 %v2574_v62, %v3609_v5  ;;  %v1231_v16 = vpop.permute.xlu2 %1230 }
 0x41a   : > { %v1235_v50 = vpop.permute.xlu0 %1234 }
 0x41b   : > { %1194 = vmatpush.xpose.msrb.mxu0 %v1122_v3  ;;  %1214 = vmatpush.xpose.msrb.mxu1 %v1123_v10 }
 0x41e   : > { %1292 = vrot.lane.b32.xlu2 %v4637_v21, %s2776_s28 }
 0x41f   : > { %1195 = vmatpush.xpose.msrb.mxu0 %v1120_v6  ;;  %1215 = vmatpush.xpose.msrb.mxu1 %v1121_v58 }
 0x421   : > { %v1237_v56 = vpop.permute.xlu2 %1236 }
 0x422   : > { %v1239_v5 = vpop.permute.xlu0 %1238 }
 0x423   : > { %1196 = vmatpush.xpose.msrb.mxu0 %v1118_v51  ;;  %1216 = vmatpush.xpose.msrb.mxu1 %v1119_v29 }
 0x427   : > { %1197 = vmatpush.xpose.msrb.mxu0 %v1116_v30  ;;  %1217 = vmatpush.xpose.msrb.mxu1 %v1117_v20  ;;  %v1277_v20 = vpop.permute.xlu1 %1276 }
 0x429   : > { %v1241_v53 = vpop.permute.xlu2 %1240 }
 0x42a   : > { %v1243_v59 = vpop.permute.xlu0 %1242 }
 0x42b   : > { %1198 = vmatpush.xpose.msrb.mxu0 %v1114_v26  ;;  %1218 = vmatpush.xpose.msrb.mxu1 %v1115_v24 }
 0x42f   : > { %1199 = vmatpush.xpose.msrb.mxu0 %v1112_v61  ;;  %1219 = vmatpush.xpose.msrb.mxu1 %v1113_v25 }
 0x431   : > { %v1245_v54 = vpop.permute.xlu2 %1244 }
 0x432   : > { %1200 = vmatmul.f32.vlgmr.msrb.gmra.mxu0 %v3668_v27  ;;  %1220 = vmatmul.f32.vlgmr.msrb.gmra.mxu1 %v3671_v49  ;;  %v1247_v36 = vpop.permute.xlu0 %1246 }
 0x433   : > { %2300 = vmatpush.msk.msra.mxu0 %vm212_vm0, %v1294_v9  ;;  %2333 = vmatpush.msk.msra.mxu1 %vm212_vm0, %v1295_v57 }
 0x439   : > { %v1249_v46 = vpop.permute.xlu2 %1248 }
 0x43a   : > { %2301 = vmatmul.msk.f32.vlgmr.msra.gmra.mxu0 %vm335_vm2, %v1231_v16  ;;  %2334 = vmatmul.msk.f32.vlgmr.msra.gmra.mxu1 %vm335_vm2, %v1231_v16  ;;  %v1251_v14 = vpop.permute.xlu0 %1250 }
 0x441   : > { %v1253_v48 = vpop.permute.xlu2 %1252 }
 0x442   : > { %2302 = vmatmul.msk.f32.gmra.mxu0 %vm335_vm2, %v1233_v7  ;;  %2335 = vmatmul.msk.f32.gmra.mxu1 %vm335_vm2, %v1233_v7  ;;  %v1255_v28 = vpop.permute.xlu0 %1254  ;;  %v1283_v7 = vpop.permute.xlu1 %1282 }
 0x449   : > { %v1257_v0 = vpop.permute.xlu2 %1256 }
 0x44a   : > { %2303 = vmatmul.msk.f32.gmra.mxu0 %vm335_vm2, %v1235_v50  ;;  %2336 = vmatmul.msk.f32.gmra.mxu1 %vm335_vm2, %v1235_v50  ;;  %v1259_v32 = vpop.permute.xlu0 %1258 }
 0x451   : > { %v1263_v34 = vpop.permute.xlu2 %1262 }
 0x452   : > { %2304 = vmatmul.msk.f32.gmra.mxu0 %vm335_vm2, %v1237_v56  ;;  %2337 = vmatmul.msk.f32.gmra.mxu1 %vm335_vm2, %v1237_v56  ;;  %v1265_v44 = vpop.permute.xlu0 %1264 }
 0x459   : > { %v1267_v8 = vpop.permute.xlu2 %1266 }
 0x45a   : > { %2305 = vmatmul.msk.f32.gmra.mxu0 %vm335_vm2, %v1239_v5  ;;  %2338 = vmatmul.msk.f32.gmra.mxu1 %vm335_vm2, %v1239_v5  ;;  %v1269_v22 = vpop.permute.xlu0 %1268 }
 0x461   : > { %v1271_v3 = vpop.permute.xlu2 %1270 }
 0x462   : > { %2306 = vmatmul.msk.f32.gmra.mxu0 %vm335_vm2, %v1241_v53  ;;  %2339 = vmatmul.msk.f32.gmra.mxu1 %vm335_vm2, %v1241_v53  ;;  %v1273_v58 = vpop.permute.xlu0 %1272 }
 0x466   : > { %v1161_v45 = vpop.f32.mrf.mxu0  ;;  %v1181_v63 = vpop.f32.mrf.mxu1 }
 0x467   : > { %v1182_v31 = vadd.f32 %v1181_v63, %v1161_v45 }
 0x469   : > { %v1275_v51 = vpop.permute.xlu2 %1274 }
 0x46a   : > { %2307 = vmatmul.msk.f32.gmra.mxu0 %vm335_vm2, %v1243_v59  ;;  %2340 = vmatmul.msk.f32.gmra.mxu1 %vm335_vm2, %v1243_v59  ;;  %v1279_v62 = vpop.permute.xlu0 %1278 }
 0x471   : > { %v1281_v9 = vpop.permute.xlu2 %1280 }
 0x472   : > { %2308 = vmatmul.msk.f32.gmra.mxu0 %vm335_vm2, %v1245_v54  ;;  %2341 = vmatmul.msk.f32.gmra.mxu1 %vm335_vm2, %v1245_v54  ;;  %v1285_v53 = vpop.permute.xlu0 %1284 }
 0x47a   : > { %2309 = vmatmul.msk.f32.gmra.mxu0 %vm335_vm2, %v1247_v36  ;;  %2342 = vmatmul.msk.f32.gmra.mxu1 %vm335_vm2, %v1247_v36 }
 0x482   : > { %2310 = vmatmul.msk.f32.gmra.mxu0 %vm335_vm2, %v1249_v46  ;;  %2343 = vmatmul.msk.f32.gmra.mxu1 %vm335_vm2, %v1249_v46  ;;  %v1287_v46 = vpop.permute.xlu2 %1286 }
 0x48a   : > { %2311 = vmatmul.msk.f32.gmra.mxu0 %vm335_vm2, %v1251_v14  ;;  %2344 = vmatmul.msk.f32.gmra.mxu1 %vm335_vm2, %v1251_v14 }
 0x492   : > { %2312 = vmatmul.msk.f32.gmra.mxu0 %vm335_vm2, %v1253_v48  ;;  %2345 = vmatmul.msk.f32.gmra.mxu1 %vm335_vm2, %v1253_v48 }
 0x49a   : > { %2313 = vmatmul.msk.f32.gmra.mxu0 %vm335_vm2, %v1255_v28  ;;  %2346 = vmatmul.msk.f32.gmra.mxu1 %vm335_vm2, %v1255_v28 }
 0x4a2   : > { %2314 = vmatmul.msk.f32.gmra.mxu0 %vm335_vm2, %v1257_v0  ;;  %2347 = vmatmul.msk.f32.gmra.mxu1 %vm335_vm2, %v1257_v0  ;;  %v1289_v0 = vpop.permute.xlu1 %1288 }
 0x4aa   : > { %2315 = vmatmul.msk.f32.gmra.mxu0 %vm335_vm2, %v1259_v32  ;;  %2348 = vmatmul.msk.f32.gmra.mxu1 %vm335_vm2, %v1259_v32 }
 0x4af   : > { %v1201_v42 = vpop.f32.mrf.mxu0  ;;  %v1221_v41 = vpop.f32.mrf.mxu1 }
 0x4b0   : > { %v1222_v33 = vadd.f32 %v1221_v41, %v1201_v42  ;;  %v1291_v42 = vpop.permute.xlu0 %1290 }
 0x4b2   : > { %v1226_v19 = vrot.slane %v1222_v33, 4  ;;  %2316 = vmatmul.msk.f32.gmra.mxu0 %vm335_vm2, %v1261_v17  ;;  %2349 = vmatmul.msk.f32.gmra.mxu1 %vm335_vm2, %v1261_v17 }
 0x4b4   : > { %v1227_v12 = vsel %vm212_vm0, %v1182_v31, %v1226_v19  ;;  %v1293_v31 = vpop.permute.xlu2 %1292 }
 0x4b5   : > { %1229 = vst [vmem:[%s3768_s7] sm:$0xff] %v1227_v12 }
 0x4b7   : > { %v3772_v38 = vpop.f32.mrf.mxu0  ;;  %v3774_v52 = vpop.f32.mrf.mxu1 }
 0x4ba   : > { %2317 = vmatmul.msk.f32.gmra.mxu0 %vm335_vm2, %v1263_v34  ;;  %2350 = vmatmul.msk.f32.gmra.mxu1 %vm335_vm2, %v1263_v34 }
 0x4bf   : > { %v3778_v39 = vpop.f32.mrf.mxu0  ;;  %v3780_v55 = vpop.f32.mrf.mxu1 }
 0x4c2   : > { %2318 = vmatmul.msk.f32.gmra.mxu0 %vm335_vm2, %v1265_v44  ;;  %2351 = vmatmul.msk.f32.gmra.mxu1 %vm335_vm2, %v1265_v44 }
 0x4c7   : > { %v3784_v47 = vpop.f32.mrf.mxu0  ;;  %v3786_v60 = vpop.f32.mrf.mxu1 }
 0x4ca   : > { %2319 = vmatmul.msk.f32.gmra.mxu0 %vm335_vm2, %v1267_v8  ;;  %2352 = vmatmul.msk.f32.gmra.mxu1 %vm335_vm2, %v1267_v8 }
 0x4cf   : > { %v3790_v43 = vpop.f32.mrf.mxu0  ;;  %v3792_v13 = vpop.f32.mrf.mxu1 }
 0x4d0   : > { %4640 = vst [vmem:[#allocation37_spill] sm:$0xff] %v3792_v13 }
 0x4d2   : > { %2320 = vmatmul.msk.f32.gmra.mxu0 %vm335_vm2, %v1269_v22  ;;  %2353 = vmatmul.msk.f32.gmra.mxu1 %vm335_vm2, %v1269_v22 }
 0x4d7   : > { %v3796_v35 = vpop.f32.mrf.mxu0  ;;  %v3798_v11 = vpop.f32.mrf.mxu1 }
 0x4d8   : > { %v1602_v37 = vmax.f32 %v3796_v35, %v3798_v11 }
 0x4da   : > { %1603 = vmax.xlane.f32.xlu2 %v1602_v37  ;;  %2321 = vmatmul.msk.f32.gmra.mxu0 %vm335_vm2, %v1271_v3 }
 0x4db   : > { %2354 = vmatmul.msk.f32.gmra.mxu1 %vm335_vm2, %v1271_v3 }
 0x4df   : > { %v3804_v10 = vpop.f32.mrf.mxu0  ;;  %v3806_v23 = vpop.f32.mrf.mxu1 }
 0x4e0   : > { %4641 = vst [vmem:[#allocation48_spill] sm:$0xff] %v3804_v10  ;;  %v1605_v6 = vmax.f32 %v3804_v10, %v3806_v23 }
 0x4e1   : > { %4642 = vst [vmem:[#allocation49_spill] sm:$0xff] %v3806_v23 }
 0x4e2   : > { %1606 = vmax.xlane.f32.xlu1 %v1605_v6  ;;  %2322 = vmatmul.msk.f32.gmra.mxu0 %vm335_vm2, %v1273_v58 }
 0x4e3   : > { %2355 = vmatmul.msk.f32.gmra.mxu1 %vm335_vm2, %v1273_v58 }
 0x4e7   : > { %v3812_v2 = vpop.f32.mrf.mxu0  ;;  %v3814_v21 = vpop.f32.mrf.mxu1 }
 0x4e8   : > { %4643 = vst [vmem:[#allocation6_spill] sm:$0xff] %v3812_v2  ;;  %v1608_v4 = vmax.f32 %v3812_v2, %v3814_v21 }
 0x4e9   : > { %4644 = vst [vmem:[#allocation46_spill] sm:$0xff] %v3814_v21 }
 0x4ea   : > { %1609 = vmax.xlane.f32.xlu0 %v1608_v4  ;;  %2323 = vmatmul.msk.f32.gmra.mxu0 %vm335_vm2, %v1275_v51 }
 0x4eb   : > { %2356 = vmatmul.msk.f32.gmra.mxu1 %vm335_vm2, %v1275_v51 }
 0x4ef   : > { %v3820_v29 = vpop.f32.mrf.mxu0  ;;  %v3822_v1 = vpop.f32.mrf.mxu1 }
 0x4f0   : > { %v1611_v30 = vmax.f32 %v3820_v29, %v3822_v1 }
 0x4f2   : > { %1612 = vmax.xlane.f32.xlu2 %v1611_v30  ;;  %2324 = vmatmul.msk.f32.gmra.mxu0 %vm335_vm2, %v1277_v20 }
 0x4f3   : > { %2357 = vmatmul.msk.f32.gmra.mxu1 %vm335_vm2, %v1277_v20 }
 0x4f7   : > { %v3828_v18 = vpop.f32.mrf.mxu0  ;;  %v3830_v26 = vpop.f32.mrf.mxu1 }
 0x4f8   : > { %v1614_v24 = vmax.f32 %v3828_v18, %v3830_v26 }
 0x4fa   : > { %1615 = vmax.xlane.f32.xlu1 %v1614_v24  ;;  %2325 = vmatmul.msk.f32.gmra.mxu0 %vm335_vm2, %v1279_v62 }
 0x4fb   : > { %2358 = vmatmul.msk.f32.gmra.mxu1 %vm335_vm2, %v1279_v62 }
 0x4ff   : > { %v3836_v61 = vpop.f32.mrf.mxu0  ;;  %v3838_v25 = vpop.f32.mrf.mxu1 }
 0x500   : > { %4645 = vst [vmem:[#allocation47_spill] sm:$0xff] %v3836_v61  ;;  %v1617_v15 = vmax.f32 %v3836_v61, %v3838_v25  ;;  %v1599_v61 = vmax.f32 %v3790_v43, %v3792_v13 }
 0x501   : > { %4646 = vst [vmem:[#allocation34_spill] sm:$0xff] %v3838_v25 }
 0x502   : > { %1618 = vmax.xlane.f32.xlu0 %v1617_v15  ;;  %2326 = vmatmul.msk.f32.gmra.mxu0 %vm335_vm2, %v1281_v9 }
 0x503   : > { %2359 = vmatmul.msk.f32.gmra.mxu1 %vm335_vm2, %v1281_v9 }
 0x507   : > { %v3844_v40 = vpop.f32.mrf.mxu0  ;;  %v3846_v57 = vpop.f32.mrf.mxu1 }
 0x508   : > { %v1620_v16 = vmax.f32 %v3844_v40, %v3846_v57 }
 0x50a   : > { %1621 = vmax.xlane.f32.xlu2 %v1620_v16  ;;  %2327 = vmatmul.msk.f32.gmra.mxu0 %vm335_vm2, %v1283_v7 }
 0x50b   : > { %2360 = vmatmul.msk.f32.gmra.mxu1 %vm335_vm2, %v1283_v7 }
 0x50f   : > { %v3852_v50 = vpop.f32.mrf.mxu0  ;;  %v3854_v56 = vpop.f32.mrf.mxu1 }
 0x510   : > { %v1623_v5 = vmax.f32 %v3852_v50, %v3854_v56 }
 0x512   : > { %1624 = vmax.xlane.f32.xlu1 %v1623_v5  ;;  %2328 = vmatmul.msk.f32.gmra.mxu0 %vm335_vm2, %v1285_v53 }
 0x513   : > { %2361 = vmatmul.msk.f32.gmra.mxu1 %vm335_vm2, %v1285_v53 }
 0x517   : > { %v3860_v59 = vpop.f32.mrf.mxu0  ;;  %v3862_v54 = vpop.f32.mrf.mxu1 }
 0x518   : > { %v1626_v36 = vmax.f32 %v3860_v59, %v3862_v54 }
 0x51a   : > { %1627 = vmax.xlane.f32.xlu0 %v1626_v36  ;;  %2329 = vmatmul.msk.f32.gmra.mxu0 %vm335_vm2, %v1287_v46 }
 0x51b   : > { %2362 = vmatmul.msk.f32.gmra.mxu1 %vm335_vm2, %v1287_v46 }
 0x51f   : > { %v3868_v14 = vpop.f32.mrf.mxu0  ;;  %v3870_v48 = vpop.f32.mrf.mxu1 }
 0x520   : > { %v1629_v28 = vmax.f32 %v3868_v14, %v3870_v48 }
 0x522   : > { %1630 = vmax.xlane.f32.xlu2 %v1629_v28  ;;  %2330 = vmatmul.msk.f32.gmra.mxu0 %vm335_vm2, %v1289_v0 }
 0x523   : > { %2363 = vmatmul.msk.f32.gmra.mxu1 %vm335_vm2, %v1289_v0 }
 0x527   : > { %v3876_v45 = vpop.f32.mrf.mxu0  ;;  %v3878_v63 = vpop.f32.mrf.mxu1 }
 0x528   : > { %v1632_v32 = vmax.f32 %v3876_v45, %v3878_v63 }
 0x52a   : > { %1633 = vmax.xlane.f32.xlu0 %v1632_v32  ;;  %2331 = vmatmul.msk.f32.gmra.mxu0 %vm335_vm2, %v1291_v42 }
 0x52b   : > { %2364 = vmatmul.msk.f32.gmra.mxu1 %vm335_vm2, %v1291_v42 }
 0x52f   : > { %v3884_v41 = vpop.f32.mrf.mxu0  ;;  %v3886_v33 = vpop.f32.mrf.mxu1 }
 0x530   : > { %v1635_v17 = vmax.f32 %v3884_v41, %v3886_v33 }
 0x532   : > { %1636 = vmax.xlane.f32.xlu1 %v1635_v17  ;;  %2332 = vmatmul.msk.f32.gmra.mxu0 %vm335_vm2, %v1293_v31 }
 0x533   : > { %2365 = vmatmul.msk.f32.gmra.mxu1 %vm335_vm2, %v1293_v31 }
 0x537   : > { %v3892_v19 = vpop.f32.mrf.mxu0  ;;  %v3894_v12 = vpop.f32.mrf.mxu1 }
 0x53f   : > { %v3896_v34 = vpop.f32.mrf.mxu0  ;;  %v3898_v44 = vpop.f32.mrf.mxu1 }
 0x547   : > { %v3900_v8 = vpop.f32.mrf.mxu0  ;;  %v3902_v22 = vpop.f32.mrf.mxu1 }
 0x54f   : > { %v3904_v37 = vpop.f32.mrf.mxu0  ;;  %v3906_v3 = vpop.f32.mrf.mxu1 }
 0x557   : > { %v3908_v6 = vpop.f32.mrf.mxu0 }
 0x558   : > { %v3910_v58 = vpop.f32.mrf.mxu1 }
 0x559   : > { %4647 = vst [vmem:[#allocation35_spill] sm:$0xff] %v3910_v58  ;;  %v1650_v13 = vmax.f32 %v3908_v6, %v3910_v58  ;;  %v1647_v58 = vmax.f32 %v3904_v37, %v3906_v3 }
 0x55d   : > { %v3944_v32 = vpop.xlane.xlu0 %1609 }
 0x55e   : > { %4654 = vst [vmem:[#allocation40_spill] sm:$0xff] %v3944_v32 }
 0x55f   : > { %v3912_v4 = vpop.f32.mrf.mxu0 }
 0x560   : > { %v3914_v51 = vpop.f32.mrf.mxu1 }
 0x567   : > { %v3916_v30 = vpop.f32.mrf.mxu0 }
 0x568   : > { %v3918_v20 = vpop.f32.mrf.mxu1 }
 0x56f   : > { %v3920_v24 = vpop.f32.mrf.mxu0 }
 0x570   : > { %4648 = vst [vmem:[#allocation44_spill] sm:$0xff] %v3920_v24  ;;  %v3922_v62 = vpop.f32.mrf.mxu1 }
 0x571   : > { %4649 = vst [vmem:[#allocation45_spill] sm:$0xff] %v3922_v62  ;;  %v1659_v15 = vmax.f32 %v3920_v24, %v3922_v62 }
 0x573   : > { %1660 = vmax.xlane.f32.xlu0 %v1659_v15  ;;  %v3952_v15 = vpop.xlane.xlu2 %1603 }
 0x577   : > { %v3926_v9 = vpop.f32.mrf.mxu0 }
 0x578   : > { %v3928_v16 = vpop.f32.mrf.mxu1 }
 0x579   : > { %v1662_v7 = vmax.f32 %v3926_v9, %v3928_v16 }
 0x57b   : > { %1663 = vmax.xlane.f32.xlu2 %v1662_v7  ;;  %v3954_v7 = vpop.xlane.xlu0 %1618  ;;  %v3962_v27 = vpop.xlane.xlu2 %1612 }
 0x57c   : > { %4655 = vst [vmem:[#allocation41_spill] sm:$0xff] %v3954_v7 }
 0x57f   : > { %v3932_v5 = vpop.f32.mrf.mxu0 }
 0x580   : > { %4650 = vst [vmem:[#allocation8_spill] sm:$0xff] %v3932_v5  ;;  %v3934_v53 = vpop.f32.mrf.mxu1 }
 0x581   : > { %4651 = vst [vmem:[#allocation54_spill] sm:$0xff] %v3934_v53  ;;  %v1665_v36 = vmax.f32 %v3932_v5, %v3934_v53 }
 0x583   : > { %1666 = vmax.xlane.f32.xlu1 %v1665_v36  ;;  %v3970_v2 = vpop.xlane.xlu2 %1621 }
 0x587   : > { %v3938_v46 = vpop.f32.mrf.mxu0 }
 0x588   : > { %4652 = vst [vmem:[#allocation42_spill] sm:$0xff] %v3938_v46  ;;  %v3940_v28 = vpop.f32.mrf.mxu1 }
 0x589   : > { %4653 = vst [vmem:[#allocation43_spill] sm:$0xff] %v3940_v28  ;;  %v1668_v0 = vmax.f32 %v3938_v46, %v3940_v28 }
 0x58b   : > { %1669 = vmax.xlane.f32.xlu0 %v1668_v0 }
 0x58d   : > { %v1628_v62 = vpop.xlane.xlu0 %1627 }
 0x58f   : > { %v3946_v42 = vpop.f32.mrf.mxu0 }
 0x590   : > { %v3948_v17 = vpop.f32.mrf.mxu1 }
 0x591   : > { %v1671_v31 = vmax.f32 %v3946_v42, %v3948_v17 }
 0x593   : > { %1672 = vmax.xlane.f32.xlu2 %v1671_v31 }
 0x595   : > { %v1631_v10 = vpop.xlane.xlu2 %1630 }
 0x597   : > { %v3956_v36 = vpop.f32.mrf.mxu0 }
 0x598   : > { %v3958_v49 = vpop.f32.mrf.mxu1 }
 0x599   : > { %v1674_v0 = vmax.f32 %v3956_v36, %v3958_v49 }
 0x59b   : > { %1675 = vmax.xlane.f32.xlu1 %v1674_v0 }
 0x59d   : > { %v1634_v32 = vpop.xlane.xlu0 %1633 }
 0x59e   : > { %v1714_v28 = vsub.f32 %v3876_v45, %v1634_v32  ;;  %v1715_v0 = vsub.f32 %v3878_v63, %v1634_v32  ;;  %v1712_v45 = vsub.f32 %v3868_v14, %v1631_v10  ;;  %v1713_v63 = vsub.f32 %v3870_v48, %v1631_v10 }
 0x59f   : > { %v3964_v24 = vpop.f32.mrf.mxu0 }
 0x5a0   : > { %v3966_v21 = vpop.f32.mrf.mxu1  ;;  %v1806_v23 = vmul.f32 1.442695, %v1714_v28  ;;  %v1808_v53 = vmul.f32 1.442695, %v1715_v0  ;;  %v1804_v14 = vmul.f32 1.442695, %v1713_v63  ;;  %v1711_v0 = vsub.f32 %v3862_v54, %v1628_v62 }
 0x5a1   : > { %v1677_v31 = vmax.f32 %v3964_v24, %v3966_v21 }
 0x5a2   : > { %2575 = vpow2.f32 %v1806_v23 }
 0x5a3   : > { %1678 = vmax.xlane.f32.xlu0 %v1677_v31  ;;  %v3982_v31 = vpop.xlane.xlu1 %1606  ;;  %2577 = vpow2.f32 %v1808_v53  ;;  %v1710_v53 = vsub.f32 %v3860_v59, %v1628_v62 }
 0x5a5   : > { %v1798_v63 = vmul.f32 1.442695, %v1710_v53  ;;  %v1596_v53 = vmax.f32 %v3784_v47, %v3786_v60 }
 0x5a7   : > { %v3973_v46 = vpop.f32.mrf.mxu0 }
 0x5a8   : > { %v3976_v25 = vpop.f32.mrf.mxu1  ;;  %v3998_v10 = vpop.eup %2575 }
 0x5a9   : > { %v1680_v7 = vmax.f32 %v3973_v46, %v3976_v25  ;;  %v4000_v48 = vpop.eup %2577 }
 0x5ab   : > { %1600 = vmax.xlane.f32.xlu0 %v1599_v61  ;;  %1681 = vmax.xlane.f32.xlu2 %v1680_v7  ;;  %v1653_v61 = vmax.f32 %v3912_v4, %v3914_v51  ;;  %v1802_v7 = vmul.f32 1.442695, %v1712_v45  ;;  %v3996_v23 = vpop.xlane.xlu1 %1615  ;;  %v1656_v45 = vmax.f32 %v3916_v30, %v3918_v20 }
 0x5ad   : > { %2579 = vpow2.f32 %v1802_v7 }
 0x5ae   : > { %2581 = vpow2.f32 %v1804_v14  ;;  %v1644_v14 = vmax.f32 %v3900_v8, %v3902_v22 }
 0x5af   : > { %v3985_v5 = vpop.f32.mrf.mxu0  ;;  %2583 = vpow2.f32 %v1798_v63 }
 0x5b0   : > { %v3988_v32 = vpop.f32.mrf.mxu1 }
 0x5b1   : > { %v1683_v28 = vmax.f32 %v3985_v5, %v3988_v32 }
 0x5b3   : > { %1651 = vmax.xlane.f32.xlu0 %v1650_v13  ;;  %1654 = vmax.xlane.f32.xlu2 %v1653_v61  ;;  %v1920_v13 = vadd.f32 %v4000_v48, %v3998_v10  ;;  %v1625_v61 = vpop.xlane.xlu1 %1624  ;;  %v4010_v59 = vpop.eup %2579 }
 0x5b4   : > { %1684 = vmax.xlane.f32.xlu1 %v1683_v28  ;;  %v1800_v28 = vmul.f32 1.442695, %v1711_v0  ;;  %v4012_v7 = vpop.eup %2581  ;;  %v1708_v54 = vsub.f32 %v3852_v50, %v1625_v61  ;;  %v1709_v62 = vsub.f32 %v3854_v56, %v1625_v61  ;;  %v1706_v56 = vsub.f32 %v3844_v40, %v3970_v2 }
 0x5b5   : > { %4656 = vst [vmem:[#allocation10_spill] sm:$0xff] %v4012_v7  ;;  %v4022_v50 = vpop.eup %2583  ;;  %v1707_v61 = vsub.f32 %v3846_v57, %v3970_v2  ;;  %v1593_v40 = vmax.f32 %v3778_v39, %v3780_v55 }
 0x5b6   : > { %2585 = vpow2.f32 %v1800_v28  ;;  %v1794_v0 = vmul.f32 1.442695, %v1708_v54 }
 0x5b8   : > { %2587 = vpow2.f32 %v1794_v0 }
 0x5bb   : > { %1648 = vmax.xlane.f32.xlu0 %v1647_v58  ;;  %1921 = vadd.xlane.f32.xlu2 %v1920_v13  ;;  %v1917_v58 = vadd.f32 %v4012_v7, %v4010_v59  ;;  %v1796_v13 = vmul.f32 1.442695, %v1709_v62  ;;  %v1641_v62 = vmax.f32 %v3896_v34, %v3898_v44 }
 0x5bc   : > { %1657 = vmax.xlane.f32.xlu1 %v1656_v45  ;;  %v1637_v45 = vpop.xlane.xlu1 %1636  ;;  %v4026_v63 = vpop.eup %2585 }
 0x5bd   : > { %v1716_v28 = vsub.f32 %v3884_v41, %v1637_v45  ;;  %2589 = vpow2.f32 %v1796_v13  ;;  %v1717_v54 = vsub.f32 %v3886_v33, %v1637_v45  ;;  %v1638_v33 = vmax.f32 %v3892_v19, %v3894_v12 }
 0x5be   : > { %v4038_v57 = vpop.eup %2587  ;;  %v1590_v13 = vmax.f32 %v3772_v38, %v3774_v52 }
 0x5bf   : > { %v1810_v7 = vmul.f32 1.442695, %v1716_v28  ;;  %v1812_v2 = vmul.f32 1.442695, %v1717_v54 }
 0x5c3   : > { %1645 = vmax.xlane.f32.xlu0 %v1644_v14  ;;  %1918 = vadd.xlane.f32.xlu2 %v1917_v58  ;;  %v1790_v14 = vmul.f32 1.442695, %v1706_v56  ;;  %v1914_v58 = vadd.f32 %v4026_v63, %v4022_v50  ;;  %v4040_v41 = vpop.eup %2589 }
 0x5c4   : > { %1597 = vmax.xlane.f32.xlu1 %v1596_v53  ;;  %v1792_v53 = vmul.f32 1.442695, %v1707_v61  ;;  %4657 = vst [vmem:[#allocation38_spill] sm:$0xff] %v4040_v41  ;;  %v1911_v0 = vadd.f32 %v4040_v41, %v4038_v57 }
 0x5c5   : > { %2591 = vpow2.f32 %v1790_v14 }
 0x5c6   : > { %2593 = vpow2.f32 %v1792_v53 }
 0x5c7   : > { %2595 = vpow2.f32 %v1810_v7 }
 0x5c8   : > { %2597 = vpow2.f32 %v1812_v2 }
 0x5cb   : > { %1642 = vmax.xlane.f32.xlu0 %v1641_v62  ;;  %1915 = vadd.xlane.f32.xlu2 %v1914_v58  ;;  %v4048_v45 = vpop.eup %2591 }
 0x5cc   : > { %1594 = vmax.xlane.f32.xlu1 %v1593_v40  ;;  %4658 = vst [vmem:[#allocation39_spill] sm:$0xff] %v4048_v45  ;;  %v4050_v56 = vpop.eup %2593 }
 0x5cd   : > { %4659 = vst [vmem:[#allocation50_spill] sm:$0xff] %v4050_v56  ;;  %v4052_v61 = vpop.eup %2595  ;;  %v1908_v28 = vadd.f32 %v4050_v56, %v4048_v45  ;;  %v1701_v56 = vsub.f32 %v3822_v1, %v3962_v27 }
 0x5ce   : > { %v4054_v7 = vpop.eup %2597 }
 0x5cf   : > { %v1923_v54 = vadd.f32 %v4054_v7, %v4052_v61 }
 0x5d3   : > { %1639 = vmax.xlane.f32.xlu0 %v1638_v33  ;;  %1912 = vadd.xlane.f32.xlu2 %v1911_v0  ;;  %v1700_v33 = vsub.f32 %v3820_v29, %v3962_v27  ;;  %v1703_v29 = vsub.f32 %v3830_v26, %v3996_v23 }
 0x5d4   : > { %1591 = vmax.xlane.f32.xlu1 %v1590_v13 }
 0x5db   : > { %1909 = vadd.xlane.f32.xlu0 %v1908_v28  ;;  %1924 = vadd.xlane.f32.xlu2 %v1923_v54  ;;  %v1778_v28 = vmul.f32 1.442695, %v1700_v33  ;;  %v1780_v54 = vmul.f32 1.442695, %v1701_v56 }
 0x5e6   : > { %v4060_v14 = vpop.xlane.xlu0 %1660 }
 0x5ee   : > { %v1664_v62 = vpop.xlane.xlu2 %1663 }
 0x5ef   : > { %v1734_v27 = vsub.f32 %v3926_v9, %v1664_v62  ;;  %v1735_v33 = vsub.f32 %v3928_v16, %v1664_v62  ;;  %v1694_v16 = vsub.f32 %v3796_v35, %v3952_v15 }
 0x5f1   : > { %v1846_v26 = vmul.f32 1.442695, %v1734_v27 }
 0x5f6   : > { %v4062_v58 = vpop.xlane.xlu1 %1666 }
 0x5fe   : > { %v4070_v45 = vpop.xlane.xlu0 %1669 }
 0x606   : > { %v1673_v53 = vpop.xlane.xlu2 %1672 }
 0x607   : > { %v1740_v40 = vsub.f32 %v3946_v42, %v1673_v53  ;;  %v1741_v2 = vsub.f32 %v3948_v17, %v1673_v53  ;;  %v1702_v42 = vsub.f32 %v3828_v18, %v3996_v23  ;;  %v1848_v23 = vmul.f32 1.442695, %v1735_v33 }
 0x609   : > { %v1858_v0 = vmul.f32 1.442695, %v1740_v40  ;;  %v1860_v13 = vmul.f32 1.442695, %v1741_v2  ;;  %v1782_v18 = vmul.f32 1.442695, %v1702_v42 }
 0x60b   : > { %2599 = vpow2.f32 %v1858_v0 }
 0x60c   : > { %2601 = vpow2.f32 %v1860_v13 }
 0x60d   : > { %2603 = vpow2.f32 %v1778_v28 }
 0x60e   : > { %v1676_v41 = vpop.xlane.xlu1 %1675  ;;  %2605 = vpow2.f32 %v1780_v54  ;;  %v1695_v54 = vsub.f32 %v3798_v11, %v3952_v15  ;;  %v1766_v11 = vmul.f32 1.442695, %v1694_v16 }
 0x60f   : > { %v1742_v17 = vsub.f32 %v3956_v36, %v1676_v41  ;;  %v1743_v53 = vsub.f32 %v3958_v49, %v1676_v41  ;;  %v1784_v36 = vmul.f32 1.442695, %v1703_v29  ;;  %v4663_v29 = vld [vmem:[#allocation54_spill] sm:$0xff] }
 0x610   : > { %v1737_v27 = vsub.f32 %v4663_v29, %v4062_v58 }
 0x611   : > { %v4078_v40 = vpop.eup %2599  ;;  %v1862_v1 = vmul.f32 1.442695, %v1742_v17  ;;  %v1864_v56 = vmul.f32 1.442695, %v1743_v53 }
 0x612   : > { %4660 = vst [vmem:[#allocation51_spill] sm:$0xff] %v4078_v40  ;;  %v4081_v2 = vpop.eup %2601 }
 0x613   : > { %4661 = vst [vmem:[#allocation12_spill] sm:$0xff] %v4081_v2  ;;  %2607 = vpow2.f32 %v1862_v1  ;;  %v1959_v49 = vadd.f32 %v4081_v2, %v4078_v40  ;;  %v4086_v0 = vpop.eup %2603 }
 0x614   : > { %2609 = vpow2.f32 %v1864_v56  ;;  %v4090_v28 = vpop.eup %2605  ;;  %v1768_v56 = vmul.f32 1.442695, %v1695_v54 }
 0x615   : > { %1960 = vadd.xlane.f32.xlu0 %v1959_v49  ;;  %2611 = vpow2.f32 %v1782_v18  ;;  %v1899_v35 = vadd.f32 %v4090_v28, %v4086_v0 }
 0x616   : > { %v1679_v41 = vpop.xlane.xlu0 %1678  ;;  %2613 = vpow2.f32 %v1784_v36 }
 0x617   : > { %v1744_v9 = vsub.f32 %v3964_v24, %v1679_v41  ;;  %v1745_v13 = vsub.f32 %v3966_v21, %v1679_v41  ;;  %2615 = vpow2.f32 %v1846_v26  ;;  %v4662_v24 = vld [vmem:[#allocation8_spill] sm:$0xff]  ;;  %v1852_v26 = vmul.f32 1.442695, %v1737_v27 }
 0x618   : > { %2617 = vpow2.f32 %v1848_v23  ;;  %v1736_v21 = vsub.f32 %v4662_v24, %v4062_v58 }
 0x619   : > { %v4094_v62 = vpop.eup %2607  ;;  %v1866_v42 = vmul.f32 1.442695, %v1744_v9  ;;  %v1868_v17 = vmul.f32 1.442695, %v1745_v13 }
 0x61a   : > { %v4098_v53 = vpop.eup %2609  ;;  %v1850_v18 = vmul.f32 1.442695, %v1736_v21  ;;  %v4667_v21 = vld [vmem:[#allocation49_spill] sm:$0xff] }
 0x61b   : > { %2619 = vpow2.f32 %v1866_v42  ;;  %v1962_v1 = vadd.f32 %v4098_v53, %v4094_v62  ;;  %v4108_v15 = vpop.eup %2611  ;;  %v4666_v42 = vld [vmem:[#allocation48_spill] sm:$0xff]  ;;  %v1697_v29 = vsub.f32 %v4667_v21, %v3982_v31 }
 0x61c   : > { %2621 = vpow2.f32 %v1868_v17  ;;  %v4110_v33 = vpop.eup %2613  ;;  %v1696_v17 = vsub.f32 %v4666_v42, %v3982_v31 }
 0x61d   : > { %1900 = vadd.xlane.f32.xlu0 %v1899_v35  ;;  %1963 = vadd.xlane.f32.xlu2 %v1962_v1  ;;  %v4114_v36 = vpop.eup %2615  ;;  %2623 = vpow2.f32 %v1766_v11  ;;  %v1902_v27 = vadd.f32 %v4110_v33, %v4108_v15 }
 0x61e   : > { %v4112_v49 = vpop.xlane.xlu0 %1600  ;;  %v1682_v58 = vpop.xlane.xlu2 %1681  ;;  %4664 = vst [vmem:[#allocation52_spill] sm:$0xff] %v4114_v36  ;;  %2625 = vpow2.f32 %v1768_v56  ;;  %v1770_v1 = vmul.f32 1.442695, %v1696_v17 }
 0x61f   : > { %v1746_v23 = vsub.f32 %v3973_v46, %v1682_v58  ;;  %v1747_v41 = vsub.f32 %v3976_v25, %v1682_v58  ;;  %v4118_v9 = vpop.eup %2617  ;;  %2627 = vpow2.f32 %v1850_v18  ;;  %v1772_v18 = vmul.f32 1.442695, %v1697_v29  ;;  %v4670_v29 = vld [vmem:[#allocation41_spill] sm:$0xff] }
 0x620   : > { %4665 = vst [vmem:[#allocation53_spill] sm:$0xff] %v4118_v9  ;;  %2629 = vpow2.f32 %v1852_v26  ;;  %v1950_v25 = vadd.f32 %v4118_v9, %v4114_v36 }
 0x621   : > { %v4120_v13 = vpop.eup %2619  ;;  %v1870_v16 = vmul.f32 1.442695, %v1746_v23  ;;  %v1872_v24 = vmul.f32 1.442695, %v1747_v41 }
 0x622   : > { %v4122_v54 = vpop.eup %2621 }
 0x623   : > { %v1965_v46 = vadd.f32 %v4122_v54, %v4120_v13  ;;  %2631 = vpow2.f32 %v1870_v16  ;;  %v4134_v35 = vpop.eup %2623 }
 0x624   : > { %2633 = vpow2.f32 %v1872_v24  ;;  %v4138_v56 = vpop.eup %2625 }
 0x625   : > { %1951 = vadd.xlane.f32.xlu0 %v1950_v25  ;;  %1966 = vadd.xlane.f32.xlu1 %v1965_v46  ;;  %v4142_v41 = vpop.eup %2627  ;;  %2635 = vpow2.f32 %v1770_v1  ;;  %v4671_v46 = vld [vmem:[#allocation47_spill] sm:$0xff] }
 0x626   : > { %1903 = vadd.xlane.f32.xlu2 %v1902_v27  ;;  %v4136_v11 = vpop.xlane.xlu0 %1651  ;;  %v1655_v31 = vpop.xlane.xlu2 %1654  ;;  %4668 = vst [vmem:[#allocation14_spill] sm:$0xff] %v4142_v41  ;;  %2637 = vpow2.f32 %v1772_v18 }
 0x627   : > { %v1728_v58 = vsub.f32 %v3912_v4, %v1655_v31  ;;  %v1729_v26 = vsub.f32 %v3914_v51, %v1655_v31  ;;  %v1685_v23 = vpop.xlane.xlu1 %1684  ;;  %v4146_v17 = vpop.eup %2629  ;;  %v1704_v4 = vsub.f32 %v4671_v46, %v4670_v29  ;;  %v1890_v51 = vadd.f32 %v4138_v56, %v4134_v35 }
 0x628   : > { %v1748_v16 = vsub.f32 %v3985_v5, %v1685_v23  ;;  %v1749_v42 = vsub.f32 %v3988_v32, %v1685_v23  ;;  %4669 = vst [vmem:[#allocation16_spill] sm:$0xff] %v4146_v17  ;;  %v4672_v5 = vld [vmem:[#allocation34_spill] sm:$0xff]  ;;  %v1953_v1 = vadd.f32 %v4146_v17, %v4142_v41 }
 0x629   : > { %v1834_v24 = vmul.f32 1.442695, %v1728_v58  ;;  %v1836_v21 = vmul.f32 1.442695, %v1729_v26  ;;  %v4148_v25 = vpop.eup %2631  ;;  %v1705_v32 = vsub.f32 %v4672_v5, %v4670_v29 }
 0x62a   : > { %v1874_v27 = vmul.f32 1.442695, %v1748_v16  ;;  %v4154_v31 = vpop.eup %2633  ;;  %v1876_v23 = vmul.f32 1.442695, %v1749_v42  ;;  %v1786_v16 = vmul.f32 1.442695, %v1704_v4 }
 0x62b   : > { %2639 = vpow2.f32 %v1834_v24  ;;  %v1968_v18 = vadd.f32 %v4154_v31, %v4148_v25  ;;  %v4164_v9 = vpop.eup %2635  ;;  %v1788_v42 = vmul.f32 1.442695, %v1705_v32  ;;  %v4674_v4 = vld [vmem:[#allocation42_spill] sm:$0xff]  ;;  %v4676_v32 = vld [vmem:[#allocation43_spill] sm:$0xff] }
 0x62c   : > { %2641 = vpow2.f32 %v1836_v21 }
 0x62d   : > { %1891 = vadd.xlane.f32.xlu0 %v1890_v51  ;;  %2643 = vpow2.f32 %v1874_v27  ;;  %1969 = vadd.xlane.f32.xlu1 %v1968_v18  ;;  %v4168_v51 = vpop.eup %2637  ;;  %v1738_v27 = vsub.f32 %v4674_v4, %v4070_v45 }
 0x62e   : > { %1954 = vadd.xlane.f32.xlu2 %v1953_v1  ;;  %v1649_v58 = vpop.xlane.xlu0 %1648  ;;  %v4162_v26 = vpop.xlane.xlu2 %1921  ;;  %2645 = vpow2.f32 %v1876_v23  ;;  %v1739_v23 = vsub.f32 %v4676_v32, %v4070_v45 }
 0x62f   : > { %v1658_v46 = vpop.xlane.xlu1 %1657  ;;  %2647 = vpow2.f32 %v1786_v16 }
 0x630   : > { %v1730_v29 = vsub.f32 %v3916_v30, %v1658_v46  ;;  %v1731_v24 = vsub.f32 %v3918_v20, %v1658_v46  ;;  %2649 = vpow2.f32 %v1788_v42  ;;  %v1893_v30 = vadd.f32 %v4168_v51, %v4164_v9 }
 0x631   : > { %v4170_v1 = vpop.eup %2639  ;;  %v1854_v42 = vmul.f32 1.442695, %v1738_v27  ;;  %v1856_v32 = vmul.f32 1.442695, %v1739_v23  ;;  %v4679_v27 = vld [vmem:[#allocation46_spill] sm:$0xff] }
 0x632   : > { %v1838_v5 = vmul.f32 1.442695, %v1730_v29  ;;  %v1840_v21 = vmul.f32 1.442695, %v1731_v24  ;;  %4673 = vst [vmem:[#allocation18_spill] sm:$0xff] %v4170_v1  ;;  %v4174_v18 = vpop.eup %2641 }
 0x633   : > { %4675 = vst [vmem:[#allocation4_spill] sm:$0xff] %v4174_v18  ;;  %v4180_v20 = vpop.eup %2643  ;;  %v1941_v46 = vadd.f32 %v4174_v18, %v4170_v1  ;;  %v4677_v18 = vld [vmem:[#allocation40_spill] sm:$0xff]  ;;  %v4678_v1 = vld [vmem:[#allocation6_spill] sm:$0xff] }
 0x634   : > { %2651 = vpow2.f32 %v1838_v5  ;;  %v4184_v29 = vpop.eup %2645 }
 0x635   : > { %2653 = vpow2.f32 %v1840_v21  ;;  %1942 = vadd.xlane.f32.xlu0 %v1941_v46  ;;  %v1971_v45 = vadd.f32 %v4184_v29, %v4180_v20  ;;  %v4192_v17 = vpop.eup %2647  ;;  %v1698_v21 = vsub.f32 %v4678_v1, %v4677_v18  ;;  %v1699_v46 = vsub.f32 %v4679_v27, %v4677_v18 }
 0x636   : > { %1894 = vadd.xlane.f32.xlu2 %v1893_v30  ;;  %v1646_v16 = vpop.xlane.xlu0 %1645  ;;  %v4186_v24 = vpop.xlane.xlu2 %1918  ;;  %2655 = vpow2.f32 %v1854_v42 }
 0x637   : > { %v1598_v4 = vpop.xlane.xlu1 %1597  ;;  %1972 = vadd.xlane.f32.xlu1 %v1971_v45  ;;  %v4196_v30 = vpop.eup %2649  ;;  %2657 = vpow2.f32 %v1856_v32  ;;  %v1776_v45 = vmul.f32 1.442695, %v1699_v46 }
 0x638   : > { %v1690_v36 = vsub.f32 %v3784_v47, %v1598_v4  ;;  %v1691_v5 = vsub.f32 %v3786_v60, %v1598_v4  ;;  %v1724_v47 = vsub.f32 %v3904_v37, %v1649_v58  ;;  %v1725_v60 = vsub.f32 %v3906_v3, %v1649_v58 }
 0x639   : > { %v1774_v4 = vmul.f32 1.442695, %v1698_v21  ;;  %v1905_v42 = vadd.f32 %v4196_v30, %v4192_v17  ;;  %v1722_v58 = vsub.f32 %v3900_v8, %v1646_v16  ;;  %v1723_v21 = vsub.f32 %v3902_v22, %v1646_v16  ;;  %v4680_v8 = vld [vmem:[#allocation44_spill] sm:$0xff]  ;;  %v4681_v16 = vld [vmem:[#allocation45_spill] sm:$0xff] }
 0x63a   : > { %v1758_v41 = vmul.f32 1.442695, %v1690_v36  ;;  %v1760_v2 = vmul.f32 1.442695, %v1691_v5  ;;  %v4200_v40 = vpop.eup %2651  ;;  %v1826_v36 = vmul.f32 1.442695, %v1724_v47 }
 0x63b   : > { %v4203_v23 = vpop.eup %2653  ;;  %v1828_v5 = vmul.f32 1.442695, %v1725_v60 }
 0x63c   : > { %2659 = vpow2.f32 %v1758_v41  ;;  %v1944_v1 = vadd.f32 %v4203_v23, %v4200_v40  ;;  %v4214_v41 = vpop.eup %2655 }
 0x63d   : > { %2661 = vpow2.f32 %v1760_v2  ;;  %v4217_v2 = vpop.eup %2657 }
 0x63e   : > { %v4208_v18 = vpop.xlane.xlu2 %1915  ;;  %1945 = vadd.xlane.f32.xlu2 %v1944_v1  ;;  %v1643_v27 = vpop.xlane.xlu0 %1642  ;;  %2663 = vpow2.f32 %v1774_v4  ;;  %v1732_v4 = vsub.f32 %v4680_v8, %v4060_v14 }
 0x63f   : > { %v1595_v37 = vpop.xlane.xlu1 %1594  ;;  %1906 = vadd.xlane.f32.xlu1 %v1905_v42  ;;  %2665 = vpow2.f32 %v1776_v45  ;;  %v1822_v42 = vmul.f32 1.442695, %v1722_v58  ;;  %v1733_v45 = vsub.f32 %v4681_v16, %v4060_v14 }
 0x640   : > { %v1688_v32 = vsub.f32 %v3778_v39, %v1595_v37  ;;  %v1689_v3 = vsub.f32 %v3780_v55, %v1595_v37  ;;  %2667 = vpow2.f32 %v1826_v36  ;;  %v1720_v39 = vsub.f32 %v3896_v34, %v1643_v27 }
 0x641   : > { %2669 = vpow2.f32 %v1828_v5  ;;  %v1721_v55 = vsub.f32 %v3898_v44, %v1643_v27  ;;  %v1824_v37 = vmul.f32 1.442695, %v1723_v21  ;;  %v1956_v44 = vadd.f32 %v4217_v2, %v4214_v41 }
 0x642   : > { %v1754_v46 = vmul.f32 1.442695, %v1688_v32  ;;  %v1756_v47 = vmul.f32 1.442695, %v1689_v3  ;;  %v4220_v1 = vpop.eup %2659  ;;  %v1818_v5 = vmul.f32 1.442695, %v1720_v39  ;;  %v1692_v39 = vsub.f32 %v3790_v43, %v4112_v49 }
 0x643   : > { %v4223_v60 = vpop.eup %2661  ;;  %v1820_v32 = vmul.f32 1.442695, %v1721_v55  ;;  %v1842_v58 = vmul.f32 1.442695, %v1732_v4  ;;  %v1844_v21 = vmul.f32 1.442695, %v1733_v45 }
 0x644   : > { %2671 = vpow2.f32 %v1754_v46  ;;  %v1884_v22 = vadd.f32 %v4223_v60, %v4220_v1  ;;  %v4234_v34 = vpop.eup %2663  ;;  %v4682_v55 = vld [vmem:[#allocation37_spill] sm:$0xff] }
 0x645   : > { %2673 = vpow2.f32 %v1756_v47  ;;  %v4238_v27 = vpop.eup %2665  ;;  %v1693_v8 = vsub.f32 %v4682_v55, %v4112_v49 }
 0x646   : > { %v4232_v36 = vpop.xlane.xlu2 %1912  ;;  %1885 = vadd.xlane.f32.xlu2 %v1884_v22  ;;  %v4240_v3 = vpop.eup %2667  ;;  %2675 = vpow2.f32 %v1822_v42  ;;  %v1896_v45 = vadd.f32 %v4238_v27, %v4234_v34 }
 0x647   : > { %1957 = vadd.xlane.f32.xlu1 %v1956_v44  ;;  %v4242_v14 = vpop.eup %2669  ;;  %2677 = vpow2.f32 %v1824_v37  ;;  %v1762_v37 = vmul.f32 1.442695, %v1692_v39  ;;  %v4684_v39 = vld [vmem:[#allocation35_spill] sm:$0xff] }
 0x648   : > { %2679 = vpow2.f32 %v1818_v5  ;;  %v1935_v4 = vadd.f32 %v4242_v14, %v4240_v3  ;;  %v1764_v5 = vmul.f32 1.442695, %v1693_v8  ;;  %v1727_v55 = vsub.f32 %v4684_v39, %v4136_v11 }
 0x649   : > { %2681 = vpow2.f32 %v1820_v32 }
 0x64a   : > { %v4244_v46 = vpop.eup %2671  ;;  %2683 = vpow2.f32 %v1842_v58 }
 0x64b   : > { %v4246_v47 = vpop.eup %2673  ;;  %2685 = vpow2.f32 %v1844_v21  ;;  %v1726_v21 = vsub.f32 %v3908_v6, %v4136_v11 }
 0x64c   : > { %v1881_v42 = vadd.f32 %v4246_v47, %v4244_v46  ;;  %v4256_v16 = vpop.eup %2675 }
 0x64d   : > { %v4260_v43 = vpop.eup %2677 }
 0x64e   : > { %v1925_v22 = vpop.xlane.xlu2 %1924  ;;  %1936 = vadd.xlane.f32.xlu2 %v1935_v4  ;;  %1882 = vadd.xlane.f32.xlu0 %v1881_v42  ;;  %v4262_v49 = vpop.eup %2679  ;;  %v1932_v42 = vadd.f32 %v4260_v43, %v4256_v16 }
 0x64f   : > { %2687 = vrcp.f32 %v1925_v22  ;;  %1897 = vadd.xlane.f32.xlu1 %v1896_v45  ;;  %v4264_v44 = vpop.eup %2681  ;;  %v1640_v4 = vpop.xlane.xlu0 %1639 }
 0x650   : > { %4683 = vst [vmem:[#allocation22_spill] sm:$0xff] %v4264_v44  ;;  %2689 = vrcp.f32 %v4162_v26  ;;  %v4267_v32 = vpop.eup %2683  ;;  %v1929_v8 = vadd.f32 %v4264_v44, %v4262_v49  ;;  %v1592_v44 = vpop.xlane.xlu1 %1591 }
 0x651   : > { %v4269_v58 = vpop.eup %2685  ;;  %2691 = vpow2.f32 %v1762_v37  ;;  %v1830_v37 = vmul.f32 1.442695, %v1726_v21  ;;  %v1687_v21 = vsub.f32 %v3774_v52, %v1592_v44 }
 0x652   : > { %2693 = vpow2.f32 %v1764_v5  ;;  %v1947_v22 = vadd.f32 %v4269_v58, %v4267_v32  ;;  %v1832_v5 = vmul.f32 1.442695, %v1727_v55 }
 0x653   : > { %2695 = vrcp.f32 %v4186_v24 }
 0x654   : > { %2697 = vrcp.f32 %v4208_v18 }
 0x655   : > { %v2688_v26 = vpop.eup %2687  ;;  %2699 = vpow2.f32 %v1830_v37  ;;  %v1719_v37 = vsub.f32 %v3894_v12, %v1640_v4 }
 0x656   : > { %1930 = vadd.xlane.f32.xlu2 %v1929_v8  ;;  %1933 = vadd.xlane.f32.xlu0 %v1932_v42  ;;  %v2036_v6 = vmul.f32 %v2688_v26, %v4052_v61  ;;  %v2037_v45 = vmul.f32 %v2688_v26, %v4054_v7  ;;  %v2690_v11 = vpop.eup %2689  ;;  %2701 = vpow2.f32 %v1832_v5  ;;  %v1686_v7 = vsub.f32 %v3772_v38, %v1592_v44 }
 0x657   : > { %1948 = vadd.xlane.f32.xlu1 %v1947_v22  ;;  %v4284_v39 = vpop.eup %2691  ;;  %v2034_v8 = vmul.f32 %v2690_v11, %v3998_v10  ;;  %v2035_v61 = vmul.f32 %v2690_v11, %v4000_v48  ;;  %2703 = vrcp.f32 %v4232_v36  ;;  %v1910_v18 = vpop.xlane.xlu0 %1909  ;;  %v4685_v22 = vld [vmem:[#allocation10_spill] sm:$0xff]  ;;  %v1752_v38 = vmul.f32 1.442695, %v1687_v21  ;;  %v4687_v21 = vld [vmem:[#allocation39_spill] sm:$0xff] }
 0x658   : > { %2076 = vmatpush.xpose.msra.mxu2 %v2036_v6  ;;  %2096 = vmatpush.xpose.msra.mxu3 %v2037_v45  ;;  %v4287_v24 = vpop.eup %2693  ;;  %v1750_v45 = vmul.f32 1.442695, %v1686_v7  ;;  %2705 = vrcp.f32 %v1910_v18 }
 0x659   : > { %v2696_v42 = vpop.eup %2695  ;;  %v1887_v55 = vadd.f32 %v4287_v24, %v4284_v39 }
 0x65a   : > { %v2032_v26 = vmul.f32 %v2696_v42, %v4010_v59  ;;  %v2698_v10 = vpop.eup %2697  ;;  %v2033_v6 = vmul.f32 %v2696_v42, %v4685_v22  ;;  %v1718_v59 = vsub.f32 %v3892_v19, %v1640_v4  ;;  %2707 = vpow2.f32 %v1750_v45  ;;  %v4688_v4 = vld [vmem:[#allocation50_spill] sm:$0xff] }
 0x65b   : > { %v4298_v48 = vpop.eup %2699  ;;  %v2030_v52 = vmul.f32 %v2698_v10, %v4022_v50  ;;  %v2031_v11 = vmul.f32 %v2698_v10, %v4026_v63  ;;  %2709 = vpow2.f32 %v1752_v38  ;;  %v1816_v63 = vmul.f32 1.442695, %v1719_v37 }
 0x65c   : > { %2077 = vmatpush.xpose.msra.mxu2 %v2034_v8  ;;  %2097 = vmatpush.xpose.msra.mxu3 %v2035_v61  ;;  %v4300_v36 = vpop.eup %2701  ;;  %v4686_v61 = vld [vmem:[#allocation38_spill] sm:$0xff]  ;;  %v1814_v50 = vmul.f32 1.442695, %v1718_v59 }
 0x65d   : > { %v2704_v44 = vpop.eup %2703  ;;  %v1938_v5 = vadd.f32 %v4300_v36, %v4298_v48 }
 0x65e   : > { %v2028_v8 = vmul.f32 %v2704_v44, %v4038_v57  ;;  %v2706_v42 = vpop.eup %2705  ;;  %v2029_v7 = vmul.f32 %v2704_v44, %v4686_v61  ;;  %2711 = vpow2.f32 %v1814_v50 }
 0x65f   : > { %1888 = vadd.xlane.f32.xlu1 %v1887_v55  ;;  %v2026_v18 = vmul.f32 %v2706_v42, %v4687_v21  ;;  %v2027_v55 = vmul.f32 %v2706_v42, %v4688_v4  ;;  %2713 = vpow2.f32 %v1816_v63 }
 0x660   : > { %2078 = vmatpush.xpose.msra.mxu2 %v2032_v26  ;;  %2098 = vmatpush.xpose.msra.mxu3 %v2033_v6  ;;  %v4310_v19 = vpop.eup %2707 }
 0x661   : > { %v4313_v12 = vpop.eup %2709 }
 0x662   : > { %v1878_v57 = vadd.f32 %v4313_v12, %v4310_v19 }
 0x664   : > { %2079 = vmatpush.xpose.msra.mxu2 %v2030_v52  ;;  %2099 = vmatpush.xpose.msra.mxu3 %v2031_v11  ;;  %v4318_v26 = vpop.eup %2711 }
 0x665   : > { %v4320_v10 = vpop.eup %2713 }
 0x666   : > { %v1926_v22 = vadd.f32 %v4320_v10, %v4318_v26 }
 0x667   : > { %1939 = vadd.xlane.f32.xlu1 %v1938_v5 }
 0x668   : > { %2080 = vmatpush.xpose.msra.mxu2 %v2028_v8  ;;  %2100 = vmatpush.xpose.msra.mxu3 %v2029_v7 }
 0x66c   : > { %2081 = vmatpush.xpose.msra.mxu2 %v2026_v18  ;;  %2101 = vmatpush.xpose.msra.mxu3 %v2027_v55 }
 0x66f   : > { %1879 = vadd.xlane.f32.xlu1 %v1878_v57 }
 0x677   : > { %1927 = vadd.xlane.f32.xlu1 %v1926_v22 }
 0x688   : > { %v4330_v52 = vpop.xlane.xlu0 %1960 }
 0x690   : > { %v4326_v45 = vpop.xlane.xlu2 %1963  ;;  %v1901_v59 = vpop.xlane.xlu0 %1900 }
 0x698   : > { %v4324_v6 = vpop.xlane.xlu1 %1966  ;;  %v4336_v42 = vpop.xlane.xlu0 %1951 }
 0x699   : > { %v1904_v44 = vpop.xlane.xlu2 %1903 }
 0x6a0   : > { %v4328_v38 = vpop.xlane.xlu1 %1969 }
 0x6a1   : > { %v4334_v5 = vpop.xlane.xlu2 %1954 }
 0x6a9   : > { %v1895_v21 = vpop.xlane.xlu2 %1894 }
 0x6aa   : > { %v4332_v11 = vpop.xlane.xlu1 %1972 }
 0x6b2   : > { %v1907_v37 = vpop.xlane.xlu1 %1906 }
 0x6b3   : > { %2715 = vrcp.f32 %v1907_v37 }
 0x6b4   : > { %2717 = vrcp.f32 %v1904_v44 }
 0x6b5   : > { %2719 = vrcp.f32 %v1901_v59 }
 0x6b9   : > { %v2716_v8 = vpop.eup %2715 }
 0x6ba   : > { %v4338_v61 = vpop.xlane.xlu1 %1957  ;;  %v2024_v7 = vmul.f32 %v2716_v8, %v4192_v17  ;;  %v2025_v50 = vmul.f32 %v2716_v8, %v4196_v30  ;;  %v2718_v63 = vpop.eup %2717 }
 0x6bb   : > { %v2022_v18 = vmul.f32 %v2718_v63, %v4108_v15  ;;  %v2023_v4 = vmul.f32 %v2718_v63, %v4110_v33  ;;  %v2720_v55 = vpop.eup %2719  ;;  %v1892_v17 = vpop.xlane.xlu0 %1891 }
 0x6bc   : > { %2082 = vmatpush.xpose.msra.mxu2 %v2024_v7  ;;  %2102 = vmatpush.xpose.msra.mxu3 %v2025_v50  ;;  %v2020_v22 = vmul.f32 %v2720_v55, %v4086_v0  ;;  %v2021_v44 = vmul.f32 %v2720_v55, %v4090_v28  ;;  %v4346_v30 = vpop.xlane.xlu2 %1945 }
 0x6c0   : > { %2083 = vmatpush.xpose.msra.mxu2 %v2022_v18  ;;  %2103 = vmatpush.xpose.msra.mxu3 %v2023_v4 }
 0x6c2   : > { %v1898_v57 = vpop.xlane.xlu1 %1897 }
 0x6c3   : > { %2721 = vrcp.f32 %v1898_v57  ;;  %v4352_v0 = vpop.xlane.xlu0 %1942 }
 0x6c4   : > { %2084 = vmatpush.xpose.msra.mxu2 %v2020_v22  ;;  %2104 = vmatpush.xpose.msra.mxu3 %v2021_v44  ;;  %2723 = vrcp.f32 %v1895_v21  ;;  %v1886_v63 = vpop.xlane.xlu2 %1885 }
 0x6c5   : > { %2725 = vrcp.f32 %v1892_v17 }
 0x6c9   : > { %v2722_v59 = vpop.eup %2721 }
 0x6ca   : > { %v4348_v15 = vpop.xlane.xlu1 %1948  ;;  %v2018_v33 = vmul.f32 %v2722_v59, %v4234_v34  ;;  %v2019_v37 = vmul.f32 %v2722_v59, %v4238_v27  ;;  %v2724_v8 = vpop.eup %2723 }
 0x6cb   : > { %v2016_v28 = vmul.f32 %v2724_v8, %v4164_v9  ;;  %v2017_v7 = vmul.f32 %v2724_v8, %v4168_v51  ;;  %v2726_v50 = vpop.eup %2725  ;;  %v1883_v27 = vpop.xlane.xlu0 %1882  ;;  %v4690_v8 = vld [vmem:[#allocation36_spill] sm:$0xff] }
 0x6cc   : > { %2085 = vmatpush.xpose.msra.mxu2 %v2018_v33  ;;  %2105 = vmatpush.xpose.msra.mxu3 %v2019_v37  ;;  %v2014_v18 = vmul.f32 %v2726_v50, %v4134_v35  ;;  %v2015_v34 = vmul.f32 %v2726_v50, %v4138_v56  ;;  %v4692_v50 = vld [vmem:[#allocation12_spill] sm:$0xff] }
 0x6d0   : > { %2086 = vmatpush.xpose.msra.mxu2 %v2016_v28  ;;  %2106 = vmatpush.xpose.msra.mxu3 %v2017_v7  ;;  %v2073_v28 = vrot.slane %v4690_v8, 4 }
 0x6d2   : > { %v1889_v21 = vpop.xlane.xlu1 %1888 }
 0x6d3   : > { %2727 = vrcp.f32 %v1889_v21  ;;  %v4694_v21 = vld [vmem:[#allocation16_spill] sm:$0xff] }
 0x6d4   : > { %2087 = vmatpush.xpose.msra.mxu2 %v2014_v18  ;;  %2107 = vmatpush.xpose.msra.mxu3 %v2015_v34  ;;  %2729 = vrcp.f32 %v1886_v63 }
 0x6d5   : > { %2731 = vrcp.f32 %v1883_v27  ;;  %v4695_v27 = vld [vmem:[#allocation52_spill] sm:$0xff] }
 0x6d6   : > { %2733 = vrcp.f32 %v4332_v11 }
 0x6d9   : > { %v2728_v4 = vpop.eup %2727 }
 0x6da   : > { %v4358_v55 = vpop.xlane.xlu1 %1939  ;;  %v2012_v9 = vmul.f32 %v2728_v4, %v4284_v39  ;;  %v2013_v51 = vmul.f32 %v2728_v4, %v4287_v24  ;;  %v2730_v57 = vpop.eup %2729  ;;  %v4696_v4 = vld [vmem:[#allocation53_spill] sm:$0xff] }
 0x6db   : > { %v2010_v35 = vmul.f32 %v2730_v57, %v4220_v1  ;;  %v2011_v56 = vmul.f32 %v2730_v57, %v4223_v60  ;;  %v2732_v22 = vpop.eup %2731  ;;  %v1937_v57 = vpop.xlane.xlu2 %1936 }
 0x6dc   : > { %2088 = vmatpush.xpose.msra.mxu2 %v2012_v9  ;;  %2108 = vmatpush.xpose.msra.mxu3 %v2013_v51  ;;  %v2008_v17 = vmul.f32 %v2732_v22, %v4244_v46  ;;  %v2009_v59 = vmul.f32 %v2732_v22, %v4246_v47  ;;  %v2734_v39 = vpop.eup %2733  ;;  %v4689_v47 = vld [vmem:[#allocation5_spill] sm:$0xff]  ;;  %v1934_v22 = vpop.xlane.xlu0 %1933 }
 0x6dd   : > { %v2068_v11 = vmul.f32 %v2734_v39, %v4180_v20  ;;  %v2069_v33 = vmul.f32 %v2734_v39, %v4184_v29  ;;  %v2072_v37 = vrot.slane %v4689_v47, 4 }
 0x6e0   : > { %2089 = vmatpush.xpose.msra.mxu2 %v2010_v35  ;;  %2109 = vmatpush.xpose.msra.mxu3 %v2011_v56 }
 0x6e2   : > { %v1880_v44 = vpop.xlane.xlu1 %1879 }
 0x6e3   : > { %2735 = vrcp.f32 %v1880_v44 }
 0x6e4   : > { %2090 = vmatpush.xpose.msra.mxu2 %v2008_v17  ;;  %2110 = vmatpush.xpose.msra.mxu3 %v2009_v59  ;;  %2737 = vrcp.f32 %v4328_v38  ;;  %v1931_v59 = vpop.xlane.xlu2 %1930 }
 0x6e5   : > { %2739 = vrcp.f32 %v4324_v6 }
 0x6e6   : > { %2741 = vrcp.f32 %v4326_v45 }
 0x6e7   : > { %2743 = vrcp.f32 %v4330_v52 }
 0x6e8   : > { %2745 = vrcp.f32 %v4338_v61 }
 0x6e9   : > { %v2736_v24 = vpop.eup %2735  ;;  %2747 = vrcp.f32 %v4334_v5 }
 0x6ea   : > { %v2006_v1 = vmul.f32 %v2736_v24, %v4310_v19  ;;  %v2007_v60 = vmul.f32 %v2736_v24, %v4313_v12  ;;  %v2738_v46 = vpop.eup %2737  ;;  %2749 = vrcp.f32 %v4336_v42 }
 0x6eb   : > { %v2066_v20 = vmul.f32 %v2738_v46, %v4148_v25  ;;  %v2067_v29 = vmul.f32 %v2738_v46, %v4154_v31  ;;  %v2740_v19 = vpop.eup %2739  ;;  %v4691_v31 = vld [vmem:[#allocation51_spill] sm:$0xff]  ;;  %2751 = vrcp.f32 %v4348_v15  ;;  %v4699_v46 = vld [vmem:[#allocation22_spill] sm:$0xff] }
 0x6ec   : > { %2091 = vmatpush.xpose.msra.mxu2 %v2006_v1  ;;  %2111 = vmatpush.xpose.msra.mxu3 %v2007_v60  ;;  %v2064_v12 = vmul.f32 %v2740_v19, %v4120_v13  ;;  %v2065_v6 = vmul.f32 %v2740_v19, %v4122_v54  ;;  %v2742_v45 = vpop.eup %2741  ;;  %2753 = vrcp.f32 %v4346_v30 }
 0x6ed   : > { %v2062_v38 = vmul.f32 %v2742_v45, %v4094_v62  ;;  %v2063_v25 = vmul.f32 %v2742_v45, %v4098_v53  ;;  %v2744_v7 = vpop.eup %2743  ;;  %v4693_v53 = vld [vmem:[#allocation14_spill] sm:$0xff]  ;;  %2755 = vrcp.f32 %v4352_v0 }
 0x6ee   : > { %v2060_v52 = vmul.f32 %v2744_v7, %v4691_v31  ;;  %v2061_v13 = vmul.f32 %v2744_v7, %v4692_v50  ;;  %v2746_v63 = vpop.eup %2745  ;;  %2757 = vrcp.f32 %v4358_v55  ;;  %v4697_v0 = vld [vmem:[#allocation18_spill] sm:$0xff] }
 0x6ef   : > { %2092 = vmatmul.f32.vlgmr.msra.gmra.mxu2 %v2072_v37  ;;  %2112 = vmatmul.f32.vlgmr.msra.gmra.mxu3 %v2073_v28  ;;  %v2058_v54 = vmul.f32 %v2746_v63, %v4214_v41  ;;  %v2059_v62 = vmul.f32 %v2746_v63, %v4217_v2  ;;  %v2748_v61 = vpop.eup %2747  ;;  %2759 = vrcp.f32 %v1937_v57 }
 0x6f0   : > { %2116 = vmatpush.xpose.msrb.mxu2 %v2068_v11  ;;  %2136 = vmatpush.xpose.msrb.mxu3 %v2069_v33  ;;  %v2056_v5 = vmul.f32 %v2748_v61, %v4693_v53  ;;  %v2057_v18 = vmul.f32 %v2748_v61, %v4694_v21  ;;  %v2750_v34 = vpop.eup %2749  ;;  %2761 = vrcp.f32 %v1934_v22 }
 0x6f1   : > { %v2054_v42 = vmul.f32 %v2750_v34, %v4695_v27  ;;  %v2055_v41 = vmul.f32 %v2750_v34, %v4696_v4  ;;  %v2752_v9 = vpop.eup %2751  ;;  %2763 = vrcp.f32 %v1931_v59 }
 0x6f2   : > { %v2052_v2 = vmul.f32 %v2752_v9, %v4267_v32  ;;  %v2053_v15 = vmul.f32 %v2752_v9, %v4269_v58  ;;  %v2754_v51 = vpop.eup %2753  ;;  %v4698_v32 = vld [vmem:[#allocation4_spill] sm:$0xff] }
 0x6f3   : > { %v2050_v30 = vmul.f32 %v2754_v51, %v4200_v40  ;;  %v2051_v35 = vmul.f32 %v2754_v51, %v4203_v23  ;;  %v2756_v56 = vpop.eup %2755  ;;  %v1928_v23 = vpop.xlane.xlu1 %1927 }
 0x6f4   : > { %2117 = vmatpush.xpose.msrb.mxu2 %v2066_v20  ;;  %2137 = vmatpush.xpose.msrb.mxu3 %v2067_v29  ;;  %v2048_v44 = vmul.f32 %v2756_v56, %v4697_v0  ;;  %v2049_v17 = vmul.f32 %v2756_v56, %v4698_v32  ;;  %v2758_v58 = vpop.eup %2757  ;;  %2765 = vrcp.f32 %v1928_v23 }
 0x6f5   : > { %v2046_v55 = vmul.f32 %v2758_v58, %v4298_v48  ;;  %v2047_v40 = vmul.f32 %v2758_v58, %v4300_v36  ;;  %v2760_v39 = vpop.eup %2759 }
 0x6f6   : > { %v2044_v24 = vmul.f32 %v2760_v39, %v4240_v3  ;;  %v2045_v1 = vmul.f32 %v2760_v39, %v4242_v14  ;;  %v2762_v60 = vpop.eup %2761 }
 0x6f7   : > { %v2042_v11 = vmul.f32 %v2762_v60, %v4256_v16  ;;  %v2043_v33 = vmul.f32 %v2762_v60, %v4260_v43  ;;  %v2764_v48 = vpop.eup %2763 }
 0x6f8   : > { %2118 = vmatpush.xpose.msrb.mxu2 %v2064_v12  ;;  %2138 = vmatpush.xpose.msrb.mxu3 %v2065_v6  ;;  %v2040_v36 = vmul.f32 %v2764_v48, %v4262_v49  ;;  %v2041_v20 = vmul.f32 %v2764_v48, %v4699_v46 }
 0x6fa   : > { %v2766_v29 = vpop.eup %2765 }
 0x6fb   : > { %v2038_v3 = vmul.f32 %v2766_v29, %v4318_v26  ;;  %v2039_v14 = vmul.f32 %v2766_v29, %v4320_v10 }
 0x6fc   : > { %2119 = vmatpush.xpose.msrb.mxu2 %v2062_v38  ;;  %2139 = vmatpush.xpose.msrb.mxu3 %v2063_v25 }
 0x700   : > { %2120 = vmatpush.xpose.msrb.mxu2 %v2060_v52  ;;  %2140 = vmatpush.xpose.msrb.mxu3 %v2061_v13 }
 0x704   : > { %2121 = vmatpush.xpose.msrb.mxu2 %v2058_v54  ;;  %2141 = vmatpush.xpose.msrb.mxu3 %v2059_v62 }
 0x708   : > { %2122 = vmatpush.xpose.msrb.mxu2 %v2056_v5  ;;  %2142 = vmatpush.xpose.msrb.mxu3 %v2057_v18 }
 0x70c   : > { %2123 = vmatpush.xpose.msrb.mxu2 %v2054_v42  ;;  %2143 = vmatpush.xpose.msrb.mxu3 %v2055_v41 }
 0x710   : > { %2124 = vmatpush.xpose.msrb.mxu2 %v2052_v2  ;;  %2144 = vmatpush.xpose.msrb.mxu3 %v2053_v15 }
 0x714   : > { %2125 = vmatpush.xpose.msrb.mxu2 %v2050_v30  ;;  %2145 = vmatpush.xpose.msrb.mxu3 %v2051_v35 }
 0x718   : > { %2126 = vmatpush.xpose.msrb.mxu2 %v2048_v44  ;;  %2146 = vmatpush.xpose.msrb.mxu3 %v2049_v17 }
 0x71c   : > { %2127 = vmatpush.xpose.msrb.mxu2 %v2046_v55  ;;  %2147 = vmatpush.xpose.msrb.mxu3 %v2047_v40 }
 0x720   : > { %2128 = vmatpush.xpose.msrb.mxu2 %v2044_v24  ;;  %2148 = vmatpush.xpose.msrb.mxu3 %v2045_v1 }
 0x724   : > { %2129 = vmatpush.xpose.msrb.mxu2 %v2042_v11  ;;  %2149 = vmatpush.xpose.msrb.mxu3 %v2043_v33 }
 0x728   : > { %2130 = vmatpush.xpose.msrb.mxu2 %v2040_v36  ;;  %2150 = vmatpush.xpose.msrb.mxu3 %v2041_v20 }
 0x72c   : > { %2131 = vmatpush.xpose.msrb.mxu2 %v2038_v3  ;;  %2151 = vmatpush.xpose.msrb.mxu3 %v2039_v14 }
 0x72f   : > { %2132 = vmatmul.f32.vlgmr.msrb.gmra.mxu2 %v2072_v37  ;;  %2152 = vmatmul.f32.vlgmr.msrb.gmra.mxu3 %v2073_v28 }
 0x772   : > { %v2093_v16 = vpop.f32.mrf.mxu2  ;;  %v2113_v43 = vpop.f32.mrf.mxu3 }
 0x773   : > { %v2114_v6 = vadd.f32 %v2113_v43, %v2093_v16 }
 0x7b2   : > { %v2133_v49 = vpop.f32.mrf.mxu2  ;;  %v2153_v19 = vpop.f32.mrf.mxu3 }
 0x7b3   : > { %v2154_v12 = vadd.f32 %v2153_v19, %v2133_v49 }
 0x7b5   : > { %v2158_v45 = vrot.slane %v2154_v12, 4 }
 0x7b7   : > { %v2159_v38 = vsel %vm212_vm0, %v2114_v6, %v2158_v45 }
 0x7b8   : > { %2366 = vst [vmem:[%s3768_s7 + $0x8] sm:$0xff] %v2159_v38 }
 0x7b9 PF: > { %s13_s12 = sadd.s32 1, %s2773_s12  }
 0x7ba   : > { %p10_p4 = scmp.ge.s32.totalorder %s13_s12, 4  }
 0x7bc   :  { %12 = sbr.rel (!%p10_p4) target bundleno = 1 (0x1), region = 63 }

</bundles_post_ra>
